<compile_context>
chip_gen: v7x
topology: tpu7x:2x2x1
jax: 0.10.0
libtpu: 0.0.40
codegen_flags: <defaults>
</compile_context>

<pallas_src>
import functools
import math

import jax
import jax.numpy as jnp
from jax import lax
from jax.experimental import pallas as pl
from jax.experimental.pallas import tpu as pltpu

H = 144                 # GRU input / hidden size
F_IN = 144
G3 = 3 * H              # 432 — fused r|z|n gate width
D1, D2, D_OUT = 256, 128, 40
D_OUT_PAD = 128         # lane-dense padded decoder output width
BN_EPS = 1e-5


def _bf16(x):
    return x.astype(jnp.bfloat16)


# ---------------------------------------------------------------------------
# Fused kernel: 2-layer GRU over the whole sequence + MLP decoder
# ---------------------------------------------------------------------------
def face_kernel(x_ref,                                   # (T*B, 144) bf16, (t, b) row order
                wih0_ref, whh0_ref, bi0_ref, bhn0_ref,   # layer-0 fused GRU params
                wih1_ref, whh1_ref, bi1_ref, bhn1_ref,   # layer-1 fused GRU params
                w1_ref, b1_ref, g1_ref, be1_ref,         # decoder Linear+BN 1
                w2_ref, b2_ref, g2_ref, be2_ref,         # decoder Linear+BN 2
                w3_ref, b3_ref,                          # decoder Linear 3 (lane-padded to 128)
                o_ref,                                   # (T*B, 128) f32
                gi0_sc, y_sc,                            # VMEM scratch
                *, T, B):
    # ---- hoisted layer-0 input projection: one large MXU matmul over all timesteps ----
    gi0_sc[...] = (jnp.dot(x_ref[...], wih0_ref[...],
                           preferred_element_type=jnp.float32) + bi0_ref[...])

    # hoist small loop-invariant bias loads out of the time loop
    bi1 = bi1_ref[...]
    bhn0 = bhn0_ref[...]
    bhn1 = bhn1_ref[...]

    def gates(gi, gh, h_prev, bhn):
        # PyTorch gate order r, z, n;  n = tanh(gi_n + r * (gh_n + b_hn))
        r = jax.nn.sigmoid(gi[:, :H] + gh[:, :H])
        z = jax.nn.sigmoid(gi[:, H:2 * H] + gh[:, H:2 * H])
        n = jnp.tanh(gi[:, 2 * H:] + r * (gh[:, 2 * H:] + bhn))
        return (1.0 - z) * n + z * h_prev

    def step(t, carry):
        h0, h1 = carry                                   # register-resident state
        row = t * B
        if B % 8 == 0:
            row = pl.multiple_of(row, 8)                 # aligned sublane slice
        gi0_t = gi0_sc[pl.ds(row, B), :]                 # precomputed layer-0 input gates
        gh0 = jnp.dot(_bf16(h0), whh0_ref[...], preferred_element_type=jnp.float32)
        h0 = gates(gi0_t, gh0, h0, bhn0)
        gi1 = jnp.dot(_bf16(h0), wih1_ref[...], preferred_element_type=jnp.float32) + bi1
        gh1 = jnp.dot(_bf16(h1), whh1_ref[...], preferred_element_type=jnp.float32)
        h1 = gates(gi1, gh1, h1, bhn1)
        y_sc[pl.ds(row, B), :] = h1
        return (h0, h1)

    h_init = jnp.zeros((B, H), jnp.float32)
    lax.fori_loop(0, T, step, (h_init, h_init))

    # ---- decoder MLP: Linear->BN->ReLU->Linear->BN->ReLU->Linear->Sigmoid ----
    def bn(z, gamma, beta):
        m = jnp.mean(z, axis=0, keepdims=True)
        m2 = jnp.mean(z * z, axis=0, keepdims=True)
        v = jnp.maximum(m2 - m * m, 0.0)                 # one-pass variance
        return (z - m) * lax.rsqrt(v + BN_EPS) * gamma + beta

    y = y_sc[...]
    z1 = jnp.dot(_bf16(y), w1_ref[...], preferred_element_type=jnp.float32) + b1_ref[...]
    a1 = jnp.maximum(bn(z1, g1_ref[...], be1_ref[...]), 0.0)
    z2 = jnp.dot(_bf16(a1), w2_ref[...], preferred_element_type=jnp.float32) + b2_ref[...]
    a2 = jnp.maximum(bn(z2, g2_ref[...], be2_ref[...]), 0.0)
    z3 = jnp.dot(_bf16(a2), w3_ref[...], preferred_element_type=jnp.float32) + b3_ref[...]
    o_ref[...] = jax.nn.sigmoid(z3)                      # lane-dense (T*B, 128) store


# ---------------------------------------------------------------------------
# Wrapper
# ---------------------------------------------------------------------------
def _full_spec(shape):
    n = len(shape)
    return pl.BlockSpec(tuple(shape), lambda i, _n=n: (0,) * _n)


def _prepare_kernel_params(p):
    """Fuse/transpose/cast PyTorch-shaped params into the kernel layout."""
    def gru_layer(l):
        wih = _bf16(p[f"w_ih_l{l}"].T)                   # (in, 3H), columns [r|z|n]
        whh = _bf16(p[f"w_hh_l{l}"].T)                   # (H, 3H)
        b_ih, b_hh = p[f"b_ih_l{l}"], p[f"b_hh_l{l}"]
        # pre-add b_ih+b_hh for r/z; n keeps b_hn separate (scaled by r in the cell)
        bi = (b_ih + jnp.concatenate([b_hh[:2 * H],
                                      jnp.zeros((H,), jnp.float32)])).reshape(1, G3)
        bhn = b_hh[2 * H:].reshape(1, H)
        return wih, whh, bi, bhn

    w3p = jnp.zeros((D2, D_OUT_PAD), jnp.float32).at[:, :D_OUT].set(p["w3"].T)
    b3p = jnp.zeros((1, D_OUT_PAD), jnp.float32).at[:, :D_OUT].set(p["b3"])
    dec = (_bf16(p["w1"].T), p["b1"].reshape(1, -1),
           p["g1"].reshape(1, -1), p["be1"].reshape(1, -1),
           _bf16(p["w2"].T), p["b2"].reshape(1, -1),
           p["g2"].reshape(1, -1), p["be2"].reshape(1, -1),
           _bf16(w3p), b3p)
    return (*gru_layer(0), *gru_layer(1), *dec)


def face_decoder_forward(x, p):
    B, T, F = x.shape
    assert F == F_IN
    rows = T * B
    # (t, b) row order inside the kernel; a single cheap XLA transpose of the input
    x2d = _bf16(jnp.transpose(x, (1, 0, 2)).reshape(rows, F))
    args = (x2d, *_prepare_kernel_params(p))

    out_pad = pl.pallas_call(
        functools.partial(face_kernel, T=T, B=B),
        out_shape=jax.ShapeDtypeStruct((rows, D_OUT_PAD), jnp.float32),
        grid=(1,),
        in_specs=[_full_spec(a.shape) for a in args],
        out_specs=_full_spec((rows, D_OUT_PAD)),
        scratch_shapes=[pltpu.VMEM((rows, G3), jnp.float32),   # hoisted layer-0 gates
                        pltpu.VMEM((rows, H), jnp.float32)],   # GRU layer-2 outputs
        compiler_params=pltpu.CompilerParams(
            dimension_semantics=("arbitrary",),
            vmem_limit_bytes=32 * 1024 * 1024),
    )(*args)

    # back to PyTorch (b, t) row order, drop lane padding -> (B*T, 40)
    return out_pad[:, :D_OUT].reshape(T, B, D_OUT).transpose(1, 0, 2).reshape(B * T, D_OUT)


# ---------------------------------------------------------------------------
# Deterministic parameter init (PyTorch shapes / init of FaceDecoder.__init__)
# ---------------------------------------------------------------------------
def init_params(key):
    it = iter(jax.random.split(key, 14))

    def u(shape, bound):
        return jax.random.uniform(next(it), shape, jnp.float32, -bound, bound)

    kb = 1.0 / math.sqrt(H)                              # PyTorch GRU default init bound
    p = {}
    for l in (0, 1):
        in_f = F_IN if l == 0 else H
        p[f"w_ih_l{l}"] = u((G3, in_f), kb)
        p[f"w_hh_l{l}"] = u((G3, H), kb)
        p[f"b_ih_l{l}"] = u((G3,), kb)
        p[f"b_hh_l{l}"] = u((G3,), kb)
    # Linear: kaiming_uniform(fan_in, relu) weights, default U(+-1/sqrt(fan_in)) biases
    p["w1"] = u((D1, F_IN), math.sqrt(6.0 / F_IN)); p["b1"] = u((D1,), 1.0 / math.sqrt(F_IN))
    p["w2"] = u((D2, D1), math.sqrt(6.0 / D1));     p["b2"] = u((D2,), 1.0 / math.sqrt(D1))
    p["w3"] = u((D_OUT, D2), math.sqrt(6.0 / D2));  p["b3"] = u((D_OUT,), 1.0 / math.sqrt(D2))
    # BatchNorm: weight=1, bias=0
    p["g1"] = jnp.ones((D1,), jnp.float32); p["be1"] = jnp.zeros((D1,), jnp.float32)
    p["g2"] = jnp.ones((D2,), jnp.float32); p["be2"] = jnp.zeros((D2,), jnp.float32)
    return p


# ---------------------------------------------------------------------------
# Pure-JAX reference (PyTorch gate math, mirrored bf16 matmuls with f32 accumulation)
# ---------------------------------------------------------------------------
def _bdot(a, b):
    return jnp.dot(a.astype(jnp.bfloat16), b.astype(jnp.bfloat16),
                   preferred_element_type=jnp.float32)


def _gru_layer_ref(x, w_ih, w_hh, b_ih, b_hh):
    B = x.shape[0]
    wih_t, whh_t = w_ih.T, w_hh.T

    def step(h, x_t):
        gi = _bdot(x_t, wih_t) + b_ih
        gh = _bdot(h, whh_t) + b_hh
        r = jax.nn.sigmoid(gi[:, :H] + gh[:, :H])
        z = jax.nn.sigmoid(gi[:, H:2 * H] + gh[:, H:2 * H])
        n = jnp.tanh(gi[:, 2 * H:] + r * gh[:, 2 * H:])
        h_new = (1.0 - z) * n + z * h
        return h_new, h_new

    h0 = jnp.zeros((B, H), jnp.float32)
    _, ys = lax.scan(step, h0, jnp.transpose(x, (1, 0, 2)))
    return jnp.transpose(ys, (1, 0, 2))


def face_decoder_ref(x, p):
    y = _gru_layer_ref(x, p["w_ih_l0"], p["w_hh_l0"], p["b_ih_l0"], p["b_hh_l0"])
    y = _gru_layer_ref(y, p["w_ih_l1"], p["w_hh_l1"], p["b_ih_l1"], p["b_hh_l1"])
    h = y.reshape(-1, H)

    def bn(z, g, b):
        m = z.mean(0, keepdims=True)
        v = ((z - m) ** 2).mean(0, keepdims=True)
        return (z - m) * lax.rsqrt(v + BN_EPS) * g + b

    a1 = jnp.maximum(bn(_bdot(h, p["w1"].T) + p["b1"], p["g1"], p["be1"]), 0.0)
    a2 = jnp.maximum(bn(_bdot(a1, p["w2"].T) + p["b2"], p["g2"], p["be2"]), 0.0)
    return jax.nn.sigmoid(_bdot(a2, p["w3"].T) + p["b3"])


if __name__ == "__main__":
    key = jax.random.PRNGKey(0)
    pkey, xkey = jax.random.split(key)
    params = init_params(pkey)

    B, T = 8, 8                                          # small demo shapes; feature dim fixed at 144
    x = jax.random.normal(xkey, (B, T, F_IN), jnp.float32)

    out = jax.block_until_ready(jax.jit(face_decoder_forward)(x, params))
    ref = jax.block_until_ready(face_decoder_ref(x, params))

    assert out.shape == (B * T, D_OUT), out.shape
    assert bool(jnp.all(jnp.isfinite(out)))
    err = float(jnp.max(jnp.abs(out - ref)))
    assert err < 1e-3, err
    print("KERNEL_OK")
</pallas_src>

<mosaic_0001>
module attributes {stable_mosaic.version = 11 : i64} {
  func.func @face_kernel(%arg0: i32, %arg1: memref<64x144xbf16, #tpu.memory_space<vmem>>, %arg2: memref<144x432xbf16, #tpu.memory_space<vmem>>, %arg3: memref<144x432xbf16, #tpu.memory_space<vmem>>, %arg4: memref<1x432xf32, #tpu.memory_space<vmem>>, %arg5: memref<1x144xf32, #tpu.memory_space<vmem>>, %arg6: memref<144x432xbf16, #tpu.memory_space<vmem>>, %arg7: memref<144x432xbf16, #tpu.memory_space<vmem>>, %arg8: memref<1x432xf32, #tpu.memory_space<vmem>>, %arg9: memref<1x144xf32, #tpu.memory_space<vmem>>, %arg10: memref<144x256xbf16, #tpu.memory_space<vmem>>, %arg11: memref<1x256xf32, #tpu.memory_space<vmem>>, %arg12: memref<1x256xf32, #tpu.memory_space<vmem>>, %arg13: memref<1x256xf32, #tpu.memory_space<vmem>>, %arg14: memref<256x128xbf16, #tpu.memory_space<vmem>>, %arg15: memref<1x128xf32, #tpu.memory_space<vmem>>, %arg16: memref<1x128xf32, #tpu.memory_space<vmem>>, %arg17: memref<1x128xf32, #tpu.memory_space<vmem>>, %arg18: memref<128x128xbf16, #tpu.memory_space<vmem>>, %arg19: memref<1x128xf32, #tpu.memory_space<vmem>>, %arg20: memref<64x128xf32, #tpu.memory_space<vmem>>, %arg21: memref<64x432xf32, #tpu.memory_space<vmem>>, %arg22: memref<64x144xf32, #tpu.memory_space<vmem>>) attributes {dimension_semantics = [#tpu.dimension_semantics<arbitrary>], iteration_bounds = array<i64: 1>, scalar_prefetch = 0 : i64, scratch_operands = 2 : i64, tpu.core_type = #tpu.core_type<tc>, window_params = [{pipeline_mode = #tpu.pipeline_mode<synchronous>, transform_indices = @transform_0, window_bounds = array<i64: 64, 144>}, {pipeline_mode = #tpu.pipeline_mode<synchronous>, transform_indices = @transform_1, window_bounds = array<i64: 144, 432>}, {pipeline_mode = #tpu.pipeline_mode<synchronous>, transform_indices = @transform_2, window_bounds = array<i64: 144, 432>}, {pipeline_mode = #tpu.pipeline_mode<synchronous>, transform_indices = @transform_3, window_bounds = array<i64: 1, 432>}, {pipeline_mode = #tpu.pipeline_mode<synchronous>, transform_indices = @transform_4, window_bounds = array<i64: 1, 144>}, {pipeline_mode = #tpu.pipeline_mode<synchronous>, transform_indices = @transform_5, window_bounds = array<i64: 144, 432>}, {pipeline_mode = #tpu.pipeline_mode<synchronous>, transform_indices = @transform_6, window_bounds = array<i64: 144, 432>}, {pipeline_mode = #tpu.pipeline_mode<synchronous>, transform_indices = @transform_7, window_bounds = array<i64: 1, 432>}, {pipeline_mode = #tpu.pipeline_mode<synchronous>, transform_indices = @transform_8, window_bounds = array<i64: 1, 144>}, {pipeline_mode = #tpu.pipeline_mode<synchronous>, transform_indices = @transform_9, window_bounds = array<i64: 144, 256>}, {pipeline_mode = #tpu.pipeline_mode<synchronous>, transform_indices = @transform_10, window_bounds = array<i64: 1, 256>}, {pipeline_mode = #tpu.pipeline_mode<synchronous>, transform_indices = @transform_11, window_bounds = array<i64: 1, 256>}, {pipeline_mode = #tpu.pipeline_mode<synchronous>, transform_indices = @transform_12, window_bounds = array<i64: 1, 256>}, {pipeline_mode = #tpu.pipeline_mode<synchronous>, transform_indices = @transform_13, window_bounds = array<i64: 256, 128>}, {pipeline_mode = #tpu.pipeline_mode<synchronous>, transform_indices = @transform_14, window_bounds = array<i64: 1, 128>}, {pipeline_mode = #tpu.pipeline_mode<synchronous>, transform_indices = @transform_15, window_bounds = array<i64: 1, 128>}, {pipeline_mode = #tpu.pipeline_mode<synchronous>, transform_indices = @transform_16, window_bounds = array<i64: 1, 128>}, {pipeline_mode = #tpu.pipeline_mode<synchronous>, transform_indices = @transform_17, window_bounds = array<i64: 128, 128>}, {pipeline_mode = #tpu.pipeline_mode<synchronous>, transform_indices = @transform_18, window_bounds = array<i64: 1, 128>}, {pipeline_mode = #tpu.pipeline_mode<synchronous>, transform_indices = @transform_19, window_bounds = array<i64: 64, 128>}]} {
    %c0 = arith.constant 0 : index
    %c0_0 = arith.constant 0 : index
    %0 = vector.load %arg1[%c0, %c0_0] : memref<64x144xbf16, #tpu.memory_space<vmem>>, vector<64x144xbf16>
    %c0_1 = arith.constant 0 : index
    %c0_2 = arith.constant 0 : index
    %1 = vector.load %arg2[%c0_1, %c0_2] : memref<144x432xbf16, #tpu.memory_space<vmem>>, vector<144x432xbf16>
    %cst = arith.constant dense<0.000000e+00> : vector<64x432xf32>
    %2 = tpu.matmul %0, %1, %cst {dimension_numbers = #tpu.dot_dimension_numbers<[1], [0], [0], [1], [0, 0, 1, 1], [], []>} : vector<64x144xbf16>, vector<144x432xbf16>, vector<64x432xf32> -> vector<64x432xf32>
    %c0_3 = arith.constant 0 : index
    %c0_4 = arith.constant 0 : index
    %3 = vector.load %arg4[%c0_3, %c0_4] : memref<1x432xf32, #tpu.memory_space<vmem>>, vector<1x432xf32>
    %4 = vector.broadcast %3 : vector<1x432xf32> to vector<64x432xf32>
    %5 = arith.addf %2, %4 : vector<64x432xf32>
    %c0_5 = arith.constant 0 : index
    %c0_6 = arith.constant 0 : index
    %6 = vector.load %arg21[%c0_5, %c0_6] : memref<64x432xf32, #tpu.memory_space<vmem>>, vector<64x432xf32>
    tpu.vector_store %arg21[%c0_5, %c0_6], %5 {strides = array<i32>} : memref<64x432xf32, #tpu.memory_space<vmem>>, vector<64x432xf32>,
    %c0_7 = arith.constant 0 : index
    %c0_8 = arith.constant 0 : index
    %7 = vector.load %arg8[%c0_7, %c0_8] : memref<1x432xf32, #tpu.memory_space<vmem>>, vector<1x432xf32>
    %c0_9 = arith.constant 0 : index
    %c0_10 = arith.constant 0 : index
    %8 = vector.load %arg5[%c0_9, %c0_10] : memref<1x144xf32, #tpu.memory_space<vmem>>, vector<1x144xf32>
    %c0_11 = arith.constant 0 : index
    %c0_12 = arith.constant 0 : index
    %9 = vector.load %arg9[%c0_11, %c0_12] : memref<1x144xf32, #tpu.memory_space<vmem>>, vector<1x144xf32>
    %cst_13 = arith.constant 0.000000e+00 : f32
    %10 = vector.broadcast %cst_13 : f32 to vector<8x144xf32>
    %c0_i32 = arith.constant 0 : i32
    %c8_i32 = arith.constant 8 : i32
    %11 = arith.addi %c0_i32, %c8_i32 : i32
    %c1_i32 = arith.constant 1 : i32
    %12:2 = scf.for %arg23 = %c0_i32 to %11 step %c1_i32 iter_args(%arg24 = %10, %arg25 = %10) -> (vector<8x144xf32>, vector<8x144xf32>)  : i32 {
      %c8_i32_57 = arith.constant 8 : i32
      %94 = arith.muli %arg23, %c8_i32_57 : i32
      %95 = tpu.assume_multiple %94, 8 : i32
      %96 = arith.index_cast %95 : i32 to index
      %c0_58 = arith.constant 0 : index
      %97 = vector.load %arg21[%96, %c0_58] : memref<64x432xf32, #tpu.memory_space<vmem>>, vector<8x432xf32>
      %98 = arith.truncf %arg24 : vector<8x144xf32> to vector<8x144xbf16>
      %c0_59 = arith.constant 0 : index
      %c0_60 = arith.constant 0 : index
      %99 = vector.load %arg3[%c0_59, %c0_60] : memref<144x432xbf16, #tpu.memory_space<vmem>>, vector<144x432xbf16>
      %cst_61 = arith.constant dense<0.000000e+00> : vector<8x432xf32>
      %100 = tpu.matmul %98, %99, %cst_61 {dimension_numbers = #tpu.dot_dimension_numbers<[1], [0], [0], [1], [0, 0, 1, 1], [], []>} : vector<8x144xbf16>, vector<144x432xbf16>, vector<8x432xf32> -> vector<8x432xf32>
      %101 = vector.extract_strided_slice %97 {offsets = [0, 0], sizes = [8, 144], strides = [1, 1]} : vector<8x432xf32> to vector<8x144xf32>
      %102 = vector.extract_strided_slice %100 {offsets = [0, 0], sizes = [8, 144], strides = [1, 1]} : vector<8x432xf32> to vector<8x144xf32>
      %103 = arith.addf %101, %102 : vector<8x144xf32>
      %104 = arith.negf %103 : vector<8x144xf32>
      %105 = math.exp %104 : vector<8x144xf32>
      %cst_62 = arith.constant 1.000000e+00 : f32
      %106 = vector.broadcast %cst_62 : f32 to vector<8x144xf32>
      %107 = arith.addf %106, %105 : vector<8x144xf32>
      %108 = arith.divf %106, %107 : vector<8x144xf32>
      %109 = vector.extract_strided_slice %97 {offsets = [0, 144], sizes = [8, 144], strides = [1, 1]} : vector<8x432xf32> to vector<8x144xf32>
      %110 = vector.extract_strided_slice %100 {offsets = [0, 144], sizes = [8, 144], strides = [1, 1]} : vector<8x432xf32> to vector<8x144xf32>
      %111 = arith.addf %109, %110 : vector<8x144xf32>
      %112 = arith.negf %111 : vector<8x144xf32>
      %113 = math.exp %112 : vector<8x144xf32>
      %cst_63 = arith.constant 1.000000e+00 : f32
      %114 = vector.broadcast %cst_63 : f32 to vector<8x144xf32>
      %115 = arith.addf %114, %113 : vector<8x144xf32>
      %116 = arith.divf %114, %115 : vector<8x144xf32>
      %117 = vector.extract_strided_slice %97 {offsets = [0, 288], sizes = [8, 144], strides = [1, 1]} : vector<8x432xf32> to vector<8x144xf32>
      %118 = vector.extract_strided_slice %100 {offsets = [0, 288], sizes = [8, 144], strides = [1, 1]} : vector<8x432xf32> to vector<8x144xf32>
      %119 = vector.broadcast %8 : vector<1x144xf32> to vector<8x144xf32>
      %120 = arith.addf %118, %119 : vector<8x144xf32>
      %121 = arith.mulf %108, %120 : vector<8x144xf32>
      %122 = arith.addf %117, %121 : vector<8x144xf32>
      %123 = math.tanh %122 : vector<8x144xf32>
      %cst_64 = arith.constant 1.000000e+00 : f32
      %124 = vector.broadcast %cst_64 : f32 to vector<8x144xf32>
      %125 = arith.subf %124, %116 : vector<8x144xf32>
      %126 = arith.mulf %125, %123 : vector<8x144xf32>
      %127 = arith.mulf %116, %arg24 : vector<8x144xf32>
      %128 = arith.addf %126, %127 : vector<8x144xf32>
      %129 = arith.truncf %128 : vector<8x144xf32> to vector<8x144xbf16>
      %c0_65 = arith.constant 0 : index
      %c0_66 = arith.constant 0 : index
      %130 = vector.load %arg6[%c0_65, %c0_66] : memref<144x432xbf16, #tpu.memory_space<vmem>>, vector<144x432xbf16>
      %cst_67 = arith.constant dense<0.000000e+00> : vector<8x432xf32>
      %131 = tpu.matmul %129, %130, %cst_67 {dimension_numbers = #tpu.dot_dimension_numbers<[1], [0], [0], [1], [0, 0, 1, 1], [], []>} : vector<8x144xbf16>, vector<144x432xbf16>, vector<8x432xf32> -> vector<8x432xf32>
      %132 = vector.broadcast %7 : vector<1x432xf32> to vector<8x432xf32>
      %133 = arith.addf %131, %132 : vector<8x432xf32>
      %134 = arith.truncf %arg25 : vector<8x144xf32> to vector<8x144xbf16>
      %c0_68 = arith.constant 0 : index
      %c0_69 = arith.constant 0 : index
      %135 = vector.load %arg7[%c0_68, %c0_69] : memref<144x432xbf16, #tpu.memory_space<vmem>>, vector<144x432xbf16>
      %cst_70 = arith.constant dense<0.000000e+00> : vector<8x432xf32>
      %136 = tpu.matmul %134, %135, %cst_70 {dimension_numbers = #tpu.dot_dimension_numbers<[1], [0], [0], [1], [0, 0, 1, 1], [], []>} : vector<8x144xbf16>, vector<144x432xbf16>, vector<8x432xf32> -> vector<8x432xf32>
      %137 = vector.extract_strided_slice %133 {offsets = [0, 0], sizes = [8, 144], strides = [1, 1]} : vector<8x432xf32> to vector<8x144xf32>
      %138 = vector.extract_strided_slice %136 {offsets = [0, 0], sizes = [8, 144], strides = [1, 1]} : vector<8x432xf32> to vector<8x144xf32>
      %139 = arith.addf %137, %138 : vector<8x144xf32>
      %140 = arith.negf %139 : vector<8x144xf32>
      %141 = math.exp %140 : vector<8x144xf32>
      %cst_71 = arith.constant 1.000000e+00 : f32
      %142 = vector.broadcast %cst_71 : f32 to vector<8x144xf32>
      %143 = arith.addf %142, %141 : vector<8x144xf32>
      %144 = arith.divf %142, %143 : vector<8x144xf32>
      %145 = vector.extract_strided_slice %133 {offsets = [0, 144], sizes = [8, 144], strides = [1, 1]} : vector<8x432xf32> to vector<8x144xf32>
      %146 = vector.extract_strided_slice %136 {offsets = [0, 144], sizes = [8, 144], strides = [1, 1]} : vector<8x432xf32> to vector<8x144xf32>
      %147 = arith.addf %145, %146 : vector<8x144xf32>
      %148 = arith.negf %147 : vector<8x144xf32>
      %149 = math.exp %148 : vector<8x144xf32>
      %cst_72 = arith.constant 1.000000e+00 : f32
      %150 = vector.broadcast %cst_72 : f32 to vector<8x144xf32>
      %151 = arith.addf %150, %149 : vector<8x144xf32>
      %152 = arith.divf %150, %151 : vector<8x144xf32>
      %153 = vector.extract_strided_slice %133 {offsets = [0, 288], sizes = [8, 144], strides = [1, 1]} : vector<8x432xf32> to vector<8x144xf32>
      %154 = vector.extract_strided_slice %136 {offsets = [0, 288], sizes = [8, 144], strides = [1, 1]} : vector<8x432xf32> to vector<8x144xf32>
      %155 = vector.broadcast %9 : vector<1x144xf32> to vector<8x144xf32>
      %156 = arith.addf %154, %155 : vector<8x144xf32>
      %157 = arith.mulf %144, %156 : vector<8x144xf32>
      %158 = arith.addf %153, %157 : vector<8x144xf32>
      %159 = math.tanh %158 : vector<8x144xf32>
      %cst_73 = arith.constant 1.000000e+00 : f32
      %160 = vector.broadcast %cst_73 : f32 to vector<8x144xf32>
      %161 = arith.subf %160, %152 : vector<8x144xf32>
      %162 = arith.mulf %161, %159 : vector<8x144xf32>
      %163 = arith.mulf %152, %arg25 : vector<8x144xf32>
      %164 = arith.addf %162, %163 : vector<8x144xf32>
      %165 = arith.index_cast %95 : i32 to index
      %c0_74 = arith.constant 0 : index
      %166 = vector.load %arg22[%165, %c0_74] : memref<64x144xf32, #tpu.memory_space<vmem>>, vector<8x144xf32>
      tpu.vector_store %arg22[%165, %c0_74], %164 {strides = array<i32>} : memref<64x144xf32, #tpu.memory_space<vmem>>, vector<8x144xf32>,
      scf.yield %128, %164 : vector<8x144xf32>, vector<8x144xf32>
    }
    %c8_i32_14 = arith.constant 8 : i32
    %c0_15 = arith.constant 0 : index
    %c0_16 = arith.constant 0 : index
    %13 = vector.load %arg22[%c0_15, %c0_16] : memref<64x144xf32, #tpu.memory_space<vmem>>, vector<64x144xf32>
    %14 = arith.truncf %13 : vector<64x144xf32> to vector<64x144xbf16>
    %c0_17 = arith.constant 0 : index
    %c0_18 = arith.constant 0 : index
    %15 = vector.load %arg10[%c0_17, %c0_18] : memref<144x256xbf16, #tpu.memory_space<vmem>>, vector<144x256xbf16>
    %cst_19 = arith.constant dense<0.000000e+00> : vector<64x256xf32>
    %16 = tpu.matmul %14, %15, %cst_19 {dimension_numbers = #tpu.dot_dimension_numbers<[1], [0], [0], [1], [0, 0, 1, 1], [], []>} : vector<64x144xbf16>, vector<144x256xbf16>, vector<64x256xf32> -> vector<64x256xf32>
    %c0_20 = arith.constant 0 : index
    %c0_21 = arith.constant 0 : index
    %17 = vector.load %arg11[%c0_20, %c0_21] : memref<1x256xf32, #tpu.memory_space<vmem>>, vector<1x256xf32>
    %18 = vector.broadcast %17 : vector<1x256xf32> to vector<64x256xf32>
    %19 = arith.addf %16, %18 : vector<64x256xf32>
    %c0_22 = arith.constant 0 : index
    %c0_23 = arith.constant 0 : index
    %20 = vector.load %arg12[%c0_22, %c0_23] : memref<1x256xf32, #tpu.memory_space<vmem>>, vector<1x256xf32>
    %c0_24 = arith.constant 0 : index
    %c0_25 = arith.constant 0 : index
    %21 = vector.load %arg13[%c0_24, %c0_25] : memref<1x256xf32, #tpu.memory_space<vmem>>, vector<1x256xf32>
    %cst_26 = arith.constant dense<0.000000e+00> : vector<256xf32>
    %22 = vector.multi_reduction <add>, %19, %cst_26 [0] : vector<64x256xf32> to vector<256xf32>
    %23 = vector.shape_cast %22 : vector<256xf32> to vector<1x256xf32>
    %cst_27 = arith.constant 6.400000e+01 : f32
    %24 = vector.broadcast %cst_27 : f32 to vector<1x256xf32>
    %25 = arith.divf %23, %24 : vector<1x256xf32>
    %26 = arith.mulf %19, %19 : vector<64x256xf32>
    %cst_28 = arith.constant dense<0.000000e+00> : vector<256xf32>
    %27 = vector.multi_reduction <add>, %26, %cst_28 [0] : vector<64x256xf32> to vector<256xf32>
    %28 = vector.shape_cast %27 : vector<256xf32> to vector<1x256xf32>
    %cst_29 = arith.constant 6.400000e+01 : f32
    %29 = vector.broadcast %cst_29 : f32 to vector<1x256xf32>
    %30 = arith.divf %28, %29 : vector<1x256xf32>
    %31 = arith.mulf %25, %25 : vector<1x256xf32>
    %32 = arith.subf %30, %31 : vector<1x256xf32>
    %cst_30 = arith.constant 0.000000e+00 : f32
    %33 = vector.broadcast %cst_30 : f32 to vector<1x256xf32>
    %34 = arith.maximumf %32, %33 : vector<1x256xf32>
    %35 = vector.broadcast %25 : vector<1x256xf32> to vector<64x256xf32>
    %36 = arith.subf %19, %35 : vector<64x256xf32>
    %cst_31 = arith.constant 9.99999974E-6 : f32
    %37 = vector.broadcast %cst_31 : f32 to vector<1x256xf32>
    %38 = arith.addf %34, %37 : vector<1x256xf32>
    %39 = math.rsqrt %38 : vector<1x256xf32>
    %40 = vector.broadcast %39 : vector<1x256xf32> to vector<64x256xf32>
    %41 = arith.mulf %36, %40 : vector<64x256xf32>
    %42 = vector.broadcast %20 : vector<1x256xf32> to vector<64x256xf32>
    %43 = arith.mulf %41, %42 : vector<64x256xf32>
    %44 = vector.broadcast %21 : vector<1x256xf32> to vector<64x256xf32>
    %45 = arith.addf %43, %44 : vector<64x256xf32>
    %cst_32 = arith.constant 0.000000e+00 : f32
    %46 = vector.broadcast %cst_32 : f32 to vector<64x256xf32>
    %47 = arith.maximumf %45, %46 : vector<64x256xf32>
    %48 = arith.truncf %47 : vector<64x256xf32> to vector<64x256xbf16>
    %c0_33 = arith.constant 0 : index
    %c0_34 = arith.constant 0 : index
    %49 = vector.load %arg14[%c0_33, %c0_34] : memref<256x128xbf16, #tpu.memory_space<vmem>>, vector<256x128xbf16>
    %cst_35 = arith.constant dense<0.000000e+00> : vector<64x128xf32>
    %50 = tpu.matmul %48, %49, %cst_35 {dimension_numbers = #tpu.dot_dimension_numbers<[1], [0], [0], [1], [0, 0, 1, 1], [], []>} : vector<64x256xbf16>, vector<256x128xbf16>, vector<64x128xf32> -> vector<64x128xf32>
    %c0_36 = arith.constant 0 : index
    %c0_37 = arith.constant 0 : index
    %51 = vector.load %arg15[%c0_36, %c0_37] : memref<1x128xf32, #tpu.memory_space<vmem>>, vector<1x128xf32>
    %52 = vector.broadcast %51 : vector<1x128xf32> to vector<64x128xf32>
    %53 = arith.addf %50, %52 : vector<64x128xf32>
    %c0_38 = arith.constant 0 : index
    %c0_39 = arith.constant 0 : index
    %54 = vector.load %arg16[%c0_38, %c0_39] : memref<1x128xf32, #tpu.memory_space<vmem>>, vector<1x128xf32>
    %c0_40 = arith.constant 0 : index
    %c0_41 = arith.constant 0 : index
    %55 = vector.load %arg17[%c0_40, %c0_41] : memref<1x128xf32, #tpu.memory_space<vmem>>, vector<1x128xf32>
    %cst_42 = arith.constant dense<0.000000e+00> : vector<128xf32>
    %56 = vector.multi_reduction <add>, %53, %cst_42 [0] : vector<64x128xf32> to vector<128xf32>
    %57 = vector.shape_cast %56 : vector<128xf32> to vector<1x128xf32>
    %cst_43 = arith.constant 6.400000e+01 : f32
    %58 = vector.broadcast %cst_43 : f32 to vector<1x128xf32>
    %59 = arith.divf %57, %58 : vector<1x128xf32>
    %60 = arith.mulf %53, %53 : vector<64x128xf32>
    %cst_44 = arith.constant dense<0.000000e+00> : vector<128xf32>
    %61 = vector.multi_reduction <add>, %60, %cst_44 [0] : vector<64x128xf32> to vector<128xf32>
    %62 = vector.shape_cast %61 : vector<128xf32> to vector<1x128xf32>
    %cst_45 = arith.constant 6.400000e+01 : f32
    %63 = vector.broadcast %cst_45 : f32 to vector<1x128xf32>
    %64 = arith.divf %62, %63 : vector<1x128xf32>
    %65 = arith.mulf %59, %59 : vector<1x128xf32>
    %66 = arith.subf %64, %65 : vector<1x128xf32>
    %cst_46 = arith.constant 0.000000e+00 : f32
    %67 = vector.broadcast %cst_46 : f32 to vector<1x128xf32>
    %68 = arith.maximumf %66, %67 : vector<1x128xf32>
    %69 = vector.broadcast %59 : vector<1x128xf32> to vector<64x128xf32>
    %70 = arith.subf %53, %69 : vector<64x128xf32>
    %cst_47 = arith.constant 9.99999974E-6 : f32
    %71 = vector.broadcast %cst_47 : f32 to vector<1x128xf32>
    %72 = arith.addf %68, %71 : vector<1x128xf32>
    %73 = math.rsqrt %72 : vector<1x128xf32>
    %74 = vector.broadcast %73 : vector<1x128xf32> to vector<64x128xf32>
    %75 = arith.mulf %70, %74 : vector<64x128xf32>
    %76 = vector.broadcast %54 : vector<1x128xf32> to vector<64x128xf32>
    %77 = arith.mulf %75, %76 : vector<64x128xf32>
    %78 = vector.broadcast %55 : vector<1x128xf32> to vector<64x128xf32>
    %79 = arith.addf %77, %78 : vector<64x128xf32>
    %cst_48 = arith.constant 0.000000e+00 : f32
    %80 = vector.broadcast %cst_48 : f32 to vector<64x128xf32>
    %81 = arith.maximumf %79, %80 : vector<64x128xf32>
    %82 = arith.truncf %81 : vector<64x128xf32> to vector<64x128xbf16>
    %c0_49 = arith.constant 0 : index
    %c0_50 = arith.constant 0 : index
    %83 = vector.load %arg18[%c0_49, %c0_50] : memref<128x128xbf16, #tpu.memory_space<vmem>>, vector<128x128xbf16>
    %cst_51 = arith.constant dense<0.000000e+00> : vector<64x128xf32>
    %84 = tpu.matmul %82, %83, %cst_51 {dimension_numbers = #tpu.dot_dimension_numbers<[1], [0], [0], [1], [0, 0, 1, 1], [], []>} : vector<64x128xbf16>, vector<128x128xbf16>, vector<64x128xf32> -> vector<64x128xf32>
    %c0_52 = arith.constant 0 : index
    %c0_53 = arith.constant 0 : index
    %85 = vector.load %arg19[%c0_52, %c0_53] : memref<1x128xf32, #tpu.memory_space<vmem>>, vector<1x128xf32>
    %86 = vector.broadcast %85 : vector<1x128xf32> to vector<64x128xf32>
    %87 = arith.addf %84, %86 : vector<64x128xf32>
    %88 = arith.negf %87 : vector<64x128xf32>
    %89 = math.exp %88 : vector<64x128xf32>
    %cst_54 = arith.constant 1.000000e+00 : f32
    %90 = vector.broadcast %cst_54 : f32 to vector<64x128xf32>
    %91 = arith.addf %90, %89 : vector<64x128xf32>
    %92 = arith.divf %90, %91 : vector<64x128xf32>
    %c0_55 = arith.constant 0 : index
    %c0_56 = arith.constant 0 : index
    %93 = vector.load %arg20[%c0_55, %c0_56] : memref<64x128xf32, #tpu.memory_space<vmem>>, vector<64x128xf32>
    tpu.vector_store %arg20[%c0_55, %c0_56], %92 {strides = array<i32>} : memref<64x128xf32, #tpu.memory_space<vmem>>, vector<64x128xf32>,
    return
  }
  func.func @transform_0(%arg0: i32) -> (i32, i32) {
    %c0_i32 = arith.constant 0 : i32
    %c0_i32_0 = arith.constant 0 : i32
    %c0_i32_1 = arith.constant 0 : i32
    return %c0_i32, %c0_i32_0 : i32, i32
  }
  func.func @transform_1(%arg0: i32) -> (i32, i32) {
    %c0_i32 = arith.constant 0 : i32
    %c0_i32_0 = arith.constant 0 : i32
    %c0_i32_1 = arith.constant 0 : i32
    return %c0_i32, %c0_i32_0 : i32, i32
  }
  func.func @transform_2(%arg0: i32) -> (i32, i32) {
    %c0_i32 = arith.constant 0 : i32
    %c0_i32_0 = arith.constant 0 : i32
    %c0_i32_1 = arith.constant 0 : i32
    return %c0_i32, %c0_i32_0 : i32, i32
  }
  func.func @transform_3(%arg0: i32) -> (i32, i32) {
    %c0_i32 = arith.constant 0 : i32
    %c0_i32_0 = arith.constant 0 : i32
    %c0_i32_1 = arith.constant 0 : i32
    return %c0_i32, %c0_i32_0 : i32, i32
  }
  func.func @transform_4(%arg0: i32) -> (i32, i32) {
    %c0_i32 = arith.constant 0 : i32
    %c0_i32_0 = arith.constant 0 : i32
    %c0_i32_1 = arith.constant 0 : i32
    return %c0_i32, %c0_i32_0 : i32, i32
  }
  func.func @transform_5(%arg0: i32) -> (i32, i32) {
    %c0_i32 = arith.constant 0 : i32
    %c0_i32_0 = arith.constant 0 : i32
    %c0_i32_1 = arith.constant 0 : i32
    return %c0_i32, %c0_i32_0 : i32, i32
  }
  func.func @transform_6(%arg0: i32) -> (i32, i32) {
    %c0_i32 = arith.constant 0 : i32
    %c0_i32_0 = arith.constant 0 : i32
    %c0_i32_1 = arith.constant 0 : i32
    return %c0_i32, %c0_i32_0 : i32, i32
  }
  func.func @transform_7(%arg0: i32) -> (i32, i32) {
    %c0_i32 = arith.constant 0 : i32
    %c0_i32_0 = arith.constant 0 : i32
    %c0_i32_1 = arith.constant 0 : i32
    return %c0_i32, %c0_i32_0 : i32, i32
  }
  func.func @transform_8(%arg0: i32) -> (i32, i32) {
    %c0_i32 = arith.constant 0 : i32
    %c0_i32_0 = arith.constant 0 : i32
    %c0_i32_1 = arith.constant 0 : i32
    return %c0_i32, %c0_i32_0 : i32, i32
  }
  func.func @transform_9(%arg0: i32) -> (i32, i32) {
    %c0_i32 = arith.constant 0 : i32
    %c0_i32_0 = arith.constant 0 : i32
    %c0_i32_1 = arith.constant 0 : i32
    return %c0_i32, %c0_i32_0 : i32, i32
  }
  func.func @transform_10(%arg0: i32) -> (i32, i32) {
    %c0_i32 = arith.constant 0 : i32
    %c0_i32_0 = arith.constant 0 : i32
    %c0_i32_1 = arith.constant 0 : i32
    return %c0_i32, %c0_i32_0 : i32, i32
  }
  func.func @transform_11(%arg0: i32) -> (i32, i32) {
    %c0_i32 = arith.constant 0 : i32
    %c0_i32_0 = arith.constant 0 : i32
    %c0_i32_1 = arith.constant 0 : i32
    return %c0_i32, %c0_i32_0 : i32, i32
  }
  func.func @transform_12(%arg0: i32) -> (i32, i32) {
    %c0_i32 = arith.constant 0 : i32
    %c0_i32_0 = arith.constant 0 : i32
    %c0_i32_1 = arith.constant 0 : i32
    return %c0_i32, %c0_i32_0 : i32, i32
  }
  func.func @transform_13(%arg0: i32) -> (i32, i32) {
    %c0_i32 = arith.constant 0 : i32
    %c0_i32_0 = arith.constant 0 : i32
    %c0_i32_1 = arith.constant 0 : i32
    return %c0_i32, %c0_i32_0 : i32, i32
  }
  func.func @transform_14(%arg0: i32) -> (i32, i32) {
    %c0_i32 = arith.constant 0 : i32
    %c0_i32_0 = arith.constant 0 : i32
    %c0_i32_1 = arith.constant 0 : i32
    return %c0_i32, %c0_i32_0 : i32, i32
  }
  func.func @transform_15(%arg0: i32) -> (i32, i32) {
    %c0_i32 = arith.constant 0 : i32
    %c0_i32_0 = arith.constant 0 : i32
    %c0_i32_1 = arith.constant 0 : i32
    return %c0_i32, %c0_i32_0 : i32, i32
  }
  func.func @transform_16(%arg0: i32) -> (i32, i32) {
    %c0_i32 = arith.constant 0 : i32
    %c0_i32_0 = arith.constant 0 : i32
    %c0_i32_1 = arith.constant 0 : i32
    return %c0_i32, %c0_i32_0 : i32, i32
  }
  func.func @transform_17(%arg0: i32) -> (i32, i32) {
    %c0_i32 = arith.constant 0 : i32
    %c0_i32_0 = arith.constant 0 : i32
    %c0_i32_1 = arith.constant 0 : i32
    return %c0_i32, %c0_i32_0 : i32, i32
  }
  func.func @transform_18(%arg0: i32) -> (i32, i32) {
    %c0_i32 = arith.constant 0 : i32
    %c0_i32_0 = arith.constant 0 : i32
    %c0_i32_1 = arith.constant 0 : i32
    return %c0_i32, %c0_i32_0 : i32, i32
  }
  func.func @transform_19(%arg0: i32) -> (i32, i32) {
    %c0_i32 = arith.constant 0 : i32
    %c0_i32_0 = arith.constant 0 : i32
    %c0_i32_1 = arith.constant 0 : i32
    return %c0_i32, %c0_i32_0 : i32, i32
  }
}

</mosaic_0001>

<bundles_post_ra>
// kernel: face_decoder_forward.1
= control target key start
LH: loop header
LB: loop body
LE: loop exit
PB: predicated region body
PF: predicated region fallthrough
CT: control target
= control target key end

     0   :  { %vm345_vm0 = vcmask 130048   ;;  %v109_v47 = vlaneseq  ;;  %vm507_vm1 = vcmask 392192   ;;  %s4558_s1 = inlined_call_operand.vmem [shape: bf16[144,432], index: 1, kind: input, shape index: {}]   ;;  %s4559_s2 = inlined_call_operand.vmem [shape: bf16[144,432], index: 2, kind: input, shape index: {}]   ;;  %s4560_s5 = inlined_call_operand.vmem [shape: bf16[144,432], index: 5, kind: input, shape index: {}]   ;;  %s4561_s6 = inlined_call_operand.vmem [shape: bf16[144,432], index: 6, kind: input, shape index: {}]   ;;  %s4562_s9 = inlined_call_operand.vmem [shape: bf16[144,256], index: 9, kind: input, shape index: {}]   ;;  %s4563_s10 = inlined_call_operand.vmem [shape: f32[1,256], index: 10, kind: input, shape index: {}]   ;;  %s4564_s11 = inlined_call_operand.vmem [shape: f32[1,256], index: 11, kind: input, shape index: {}]   ;;  %s4565_s12 = inlined_call_operand.vmem [shape: f32[1,256], index: 12, kind: input, shape index: {}]   ;;  %s4566_s13 = inlined_call_operand.vmem [shape: bf16[256,128], index: 13, kind: input, shape index: {}]   ;;  %s4567_s14 = inlined_call_operand.vmem [shape: f32[1,128], index: 14, kind: input, shape index: {}]   ;;  %s4568_s15 = inlined_call_operand.vmem [shape: f32[1,128], index: 15, kind: input, shape index: {}]   ;;  %s4569_s16 = inlined_call_operand.vmem [shape: f32[1,128], index: 16, kind: input, shape index: {}]   ;;  %s4570_s17 = inlined_call_operand.vmem [shape: bf16[128,128], index: 17, kind: input, shape index: {}]   ;;  %s4571_s18 = inlined_call_operand.vmem [shape: f32[1,128], index: 18, kind: input, shape index: {}]   ;;  %s4572_s19 = inlined_call_operand.vmem [shape: f32[64,128], index: 19, kind: output, shape index: {}]   ;;  %s4573_s0 = inlined_call_operand.vmem [shape: bf16[64,144], index: 0, kind: input, shape index: {}]   ;;  %s4574_s4 = inlined_call_operand.vmem [shape: f32[1,144], index: 4, kind: input, shape index: {}]   ;;  %s4575_s7 = inlined_call_operand.vmem [shape: f32[1,432], index: 7, kind: input, shape index: {}]   ;;  %s4576_s8 = inlined_call_operand.vmem [shape: f32[1,144], index: 8, kind: input, shape index: {}]   ;;  %s4577_s3 = inlined_call_operand.vmem [shape: f32[1,432], index: 3, kind: input, shape index: {}]  }
   0x1   :  { %4582 = sst [smem:[#allocation4_spill]] %s4558_s1  ;;  %v3066_v30 = vld [vmem:[%s4573_s0 + $0x4] ss:$8 sps:$4 sm:$0xff]   ;;  %v3064_v37 = vld [vmem:[%s4573_s0] ss:$8 sps:$4 sm:$0xff]  }
   0x2   :  { %4583 = sst [smem:[#allocation5_spill]] %s4559_s2  ;;  %s4586_s20 = sld [smem:[#allocation4_spill]]  ;;  %2676 = vmatprep.mubr.msk.bf16.mxu0 %vm345_vm0, %v3066_v30  ;;  %2680 = vmatprep.mubr.msk.bf16.mxu1 %vm345_vm0, %v3066_v30  ;;  %v3067_v38 = vld [vmem:[%s4573_s0 + $0x14] ss:$8 sps:$4 sm:$0xff]   ;;  %v3069_v39 = vld [vmem:[%s4573_s0 + $0x10] ss:$8 sps:$4 sm:$0xff]  }
   0x3   :  { %4584 = sst [smem:[#allocation6_spill]] %s4560_s5  ;;  %v3070_v40 = vld [vmem:[%s4573_s0 + $0x24] ss:$8 sps:$4 sm:$0xff]   ;;  %v3072_v41 = vld [vmem:[%s4573_s0 + $0x20] ss:$8 sps:$4 sm:$0xff]   ;;  %v3657_v48 = vshrl.u32 %v109_v47, 7 }
   0x4   :  { %4585 = sst [smem:[#allocation7_spill]] %s4561_s6  ;;  %v3073_v42 = vld [vmem:[%s4573_s0 + $0x34] ss:$8 sps:$4 sm:$0xff]   ;;  %v3075_v43 = vld [vmem:[%s4573_s0 + $0x30] ss:$8 sps:$4 sm:$0xff]  }
   0x5   :  { %v3645_v44 = vld [vmem:[%s4575_s7] sm:$0xf]  ;;  %v3660_v49 = vsub.s32 0, %v3657_v48  ;;  %v119_v50 = vsub.s32 2, %v3657_v48  ;;  %v3667_v52 = vsub.s32 1, %v3657_v48  ;;  %v123_v53 = vsub.s32 3, %v3657_v48 }
   0x6   :  { %v3650_v45 = vld [vmem:[%s4574_s4] sm:$0x3] }
   0x7   :  { %v3655_v46 = vld [vmem:[%s4576_s8] sm:$0x3] }
   0x8   :  { %v3010_v0 = vld [vmem:[%s4586_s20 + $0x4] ss:$16 sps:$4 sm:$0xff]   ;;  %v3012_v1 = vld [vmem:[%s4586_s20 + $0xc] ss:$16 sps:$4 sm:$0xff]   ;;  %v3014_v2 = vld [vmem:[%s4586_s20] ss:$16 sps:$4 sm:$0xff]  }
   0x9   :  { %358 = vmatprep.subr.bf16.mxu0 %v3010_v0  ;;  %v3015_v3 = vld [vmem:[%s4586_s20 + $0x8] ss:$16 sps:$4 sm:$0xff]   ;;  %431 = vmatprep.subr.bf16.mxu1 %v3012_v1  ;;  %v3016_v4 = vld [vmem:[%s4586_s20 + $0x24] ss:$16 sps:$4 sm:$0xff]   ;;  %v3018_v5 = vld [vmem:[%s4586_s20 + $0x2c] ss:$16 sps:$4 sm:$0xff]  }
   0xa   :  { %359 = vmatpush1.bf16.msra.mxu0 %v3014_v2  ;;  %432 = vmatpush1.bf16.msra.mxu1 %v3015_v3  ;;  %v3020_v6 = vld [vmem:[%s4586_s20 + $0x20] ss:$16 sps:$4 sm:$0xff]   ;;  %v3021_v7 = vld [vmem:[%s4586_s20 + $0x28] ss:$16 sps:$4 sm:$0xff]   ;;  %v3022_v8 = vld [vmem:[%s4586_s20 + $0x44] ss:$16 sps:$4 sm:$0xff]  }
   0xb   :  { %360 = vmatprep.subr.bf16.mxu0 %v3016_v4  ;;  %433 = vmatprep.subr.bf16.mxu1 %v3018_v5  ;;  %v3024_v9 = vld [vmem:[%s4586_s20 + $0x4c] ss:$16 sps:$4 sm:$0xff]   ;;  %v3026_v10 = vld [vmem:[%s4586_s20 + $0x40] ss:$16 sps:$4 sm:$0xff]   ;;  %v3027_v11 = vld [vmem:[%s4586_s20 + $0x48] ss:$16 sps:$4 sm:$0xff]  }
   0xc   :  { %v3028_v12 = vld [vmem:[%s4586_s20 + $0x64] ss:$16 sps:$4 sm:$0xff]   ;;  %v3030_v13 = vld [vmem:[%s4586_s20 + $0x6c] ss:$16 sps:$4 sm:$0xff]   ;;  %v3032_v14 = vld [vmem:[%s4586_s20 + $0x60] ss:$16 sps:$4 sm:$0xff]  }
   0xd   :  { %v3033_v15 = vld [vmem:[%s4586_s20 + $0x68] ss:$16 sps:$4 sm:$0xff]   ;;  %v3034_v16 = vld [vmem:[%s4586_s20 + $0x84] ss:$16 sps:$4 sm:$0xff]   ;;  %v3036_v17 = vld [vmem:[%s4586_s20 + $0x8c] ss:$16 sps:$4 sm:$0xff]  }
   0xe   :  { %361 = vmatpush1.bf16.msra.mxu0 %v3020_v6  ;;  %434 = vmatpush1.bf16.msra.mxu1 %v3021_v7  ;;  %v3038_v18 = vld [vmem:[%s4586_s20 + $0x80] ss:$16 sps:$4 sm:$0xff]   ;;  %v3039_v19 = vld [vmem:[%s4586_s20 + $0x88] ss:$16 sps:$4 sm:$0xff]   ;;  %v3040_v20 = vld [vmem:[%s4586_s20 + $0xa4] ss:$16 sps:$4 sm:$0xff]  }
   0xf   :  { %362 = vmatprep.subr.bf16.mxu0 %v3022_v8  ;;  %435 = vmatprep.subr.bf16.mxu1 %v3024_v9  ;;  %v3042_v21 = vld [vmem:[%s4586_s20 + $0xac] ss:$16 sps:$4 sm:$0xff]   ;;  %v3044_v22 = vld [vmem:[%s4586_s20 + $0xa0] ss:$16 sps:$4 sm:$0xff]   ;;  %v3045_v23 = vld [vmem:[%s4586_s20 + $0xa8] ss:$16 sps:$4 sm:$0xff]  }
  0x10   :  { %v3046_v24 = vld [vmem:[%s4586_s20 + $0xc4] ss:$16 sps:$4 sm:$0xff]   ;;  %v3048_v25 = vld [vmem:[%s4586_s20 + $0xcc] ss:$16 sps:$4 sm:$0xff]   ;;  %v3050_v26 = vld [vmem:[%s4586_s20 + $0xc0] ss:$16 sps:$4 sm:$0xff]  }
  0x11   :  { %v3051_v27 = vld [vmem:[%s4586_s20 + $0xc8] ss:$16 sps:$4 sm:$0xff]   ;;  %v3052_v28 = vld [vmem:[%s4586_s20 + $0xe4] ss:$16 sps:$4 sm:$0xff]   ;;  %v3054_v29 = vld [vmem:[%s4586_s20 + $0xec] ss:$16 sps:$4 sm:$0xff]  }
  0x12   :  { %363 = vmatpush1.bf16.msra.mxu0 %v3026_v10  ;;  %436 = vmatpush1.bf16.msra.mxu1 %v3027_v11  ;;  %v3056_v31 = vld [vmem:[%s4586_s20 + $0xe0] ss:$16 sps:$4 sm:$0xff]   ;;  %v3057_v32 = vld [vmem:[%s4586_s20 + $0xe8] ss:$16 sps:$4 sm:$0xff]   ;;  %v3058_v33 = vld [vmem:[%s4586_s20 + $0x104] ss:$16 sps:$4 sm:$0xff]  }
  0x13   :  { %364 = vmatprep.subr.bf16.mxu0 %v3028_v12  ;;  %437 = vmatprep.subr.bf16.mxu1 %v3030_v13  ;;  %v3060_v34 = vld [vmem:[%s4586_s20 + $0x10c] ss:$16 sps:$4 sm:$0xff]   ;;  %v3062_v35 = vld [vmem:[%s4586_s20 + $0x100] ss:$16 sps:$4 sm:$0xff]   ;;  %v3063_v36 = vld [vmem:[%s4586_s20 + $0x108] ss:$16 sps:$4 sm:$0xff]  }
  0x14   :  { %v107_v51 = vld [vmem:[%s4577_s3] sm:$0xf]  ;;  %s3732_s3 = smov 0  }
  0x15   :  { %v3671_v54 = vrot.slane %v107_v51, %v3660_v49  ;;  %v3675_v55 = vrot.slane %v107_v51, %v119_v50  ;;  %v3678_v56 = vrot.slane %v107_v51, %v3667_v52  ;;  %v3682_v57 = vrot.slane %v107_v51, %v123_v53 }
  0x16   :  { %365 = vmatpush1.bf16.msra.mxu0 %v3032_v14  ;;  %438 = vmatpush1.bf16.msra.mxu1 %v3033_v15 }
  0x17   :  { %366 = vmatprep.subr.bf16.mxu0 %v3034_v16  ;;  %439 = vmatprep.subr.bf16.mxu1 %v3036_v17 }
  0x1a   :  { %367 = vmatpush1.bf16.msra.mxu0 %v3038_v18  ;;  %440 = vmatpush1.bf16.msra.mxu1 %v3039_v19 }
  0x1b   :  { %368 = vmatprep.subr.bf16.mxu0 %v3040_v20  ;;  %441 = vmatprep.subr.bf16.mxu1 %v3042_v21 }
  0x1e   :  { %369 = vmatpush1.bf16.msra.mxu0 %v3044_v22  ;;  %442 = vmatpush1.bf16.msra.mxu1 %v3045_v23 }
  0x1f   :  { %370 = vmatprep.subr.bf16.mxu0 %v3046_v24  ;;  %443 = vmatprep.subr.bf16.mxu1 %v3048_v25 }
  0x22   :  { %371 = vmatpush1.bf16.msra.mxu0 %v3050_v26  ;;  %444 = vmatpush1.bf16.msra.mxu1 %v3051_v27 }
  0x23   :  { %372 = vmatprep.subr.bf16.mxu0 %v3052_v28  ;;  %445 = vmatprep.subr.bf16.mxu1 %v3054_v29 }
  0x26   :  { %373 = vmatpush1.bf16.msra.mxu0 %v3056_v31  ;;  %446 = vmatpush1.bf16.msra.mxu1 %v3057_v32 }
  0x27   :  { %374 = vmatprep.subr.bf16.mxu0 %v3058_v33  ;;  %447 = vmatprep.subr.bf16.mxu1 %v3060_v34 }
  0x2a   :  { %375 = vmatpush1.bf16.msra.mxu0 %v3062_v35  ;;  %448 = vmatpush1.bf16.msra.mxu1 %v3063_v36 }
  0x2d   :  { %391 = vmatmul.mubr.bf16.vlgmr.msra.gmra.mrb[0].mxu0 %v3064_v37  ;;  %464 = vmatmul.mubr.bf16.vlgmr.msra.gmra.mrb[0].mxu1 %v3064_v37 }
  0x2e   :  { %2677 = vmatprep.mubr.msk.bf16.mxu0 %vm345_vm0, %v3067_v38  ;;  %2681 = vmatprep.mubr.msk.bf16.mxu1 %vm345_vm0, %v3067_v38 }
  0x35   :  { %401 = vmatmul.mubr.bf16.gmra.mrb[4].mxu0 %v3069_v39  ;;  %474 = vmatmul.mubr.bf16.gmra.mrb[4].mxu1 %v3069_v39 }
  0x36   :  { %2678 = vmatprep.mubr.msk.bf16.mxu0 %vm345_vm0, %v3070_v40  ;;  %2682 = vmatprep.mubr.msk.bf16.mxu1 %vm345_vm0, %v3070_v40 }
  0x3d   :  { %411 = vmatmul.mubr.bf16.gmra.mrb[8].mxu0 %v3072_v41  ;;  %484 = vmatmul.mubr.bf16.gmra.mrb[8].mxu1 %v3072_v41 }
  0x3e   :  { %2679 = vmatprep.mubr.msk.bf16.mxu0 %vm345_vm0, %v3073_v42  ;;  %2683 = vmatprep.mubr.msk.bf16.mxu1 %vm345_vm0, %v3073_v42 }
  0x45   :  { %421 = vmatmul.mubr.bf16.gmra.mrb[12].mxu0 %v3075_v43  ;;  %494 = vmatmul.mubr.bf16.gmra.mrb[12].mxu1 %v3075_v43 }
 0x100   :  { %v392_v58 = vpop.f32.mrb[0].mxu0  ;;  %v465_v59 = vpop.f32.mrb[0].mxu1 }
 0x101   :  { %v393_v60 = vadd.f32 %v392_v58, %v3671_v54  ;;  %v466_v61 = vadd.f32 %v465_v59, %v3675_v55  ;;  %v394_v62 = vpop.f32.mrb[1].mxu0  ;;  %v467_v63 = vpop.f32.mrb[1].mxu1 }
 0x102   :  { %v395_v0 = vadd.f32 %v394_v62, %v3678_v56  ;;  %v468_v1 = vadd.f32 %v467_v63, %v3682_v57  ;;  %v396_v2 = vpop.f32.mrb[2].mxu0  ;;  %v469_v3 = vpop.f32.mrb[2].mxu1 }
 0x103   :  { %504 = vst [vmem:[#allocation2] sm:$0xff] %v393_v60  ;;  %506 = vst [vmem:[#allocation2 + $0x10] sm:$0xff] %v466_v61  ;;  %v397_v4 = vadd.f32 %v396_v2, %v3671_v54  ;;  %v470_v5 = vadd.f32 %v469_v3, %v3675_v55  ;;  %v398_v6 = vpop.f32.mrb[3].mxu0  ;;  %v471_v7 = vpop.f32.mrb[3].mxu1 }
 0x104   :  { %505 = vst [vmem:[#allocation2 + $0x8] sm:$0xff] %v395_v0  ;;  %508 = vst.msk [vmem:[#allocation2 + $0x18] sm:$0xff] %vm507_vm1, %v468_v1  ;;  %v399_v8 = vadd.f32 %v398_v6, %v3678_v56  ;;  %v472_v9 = vadd.f32 %v471_v7, %v3682_v57  ;;  %v3724_v6 = vmov 0.0   ;;  %v3726_v7 = vmov 0.0  }
 0x105   :  { %509 = vst [vmem:[#allocation2 + $0x20] sm:$0xff] %v397_v4  ;;  %511 = vst [vmem:[#allocation2 + $0x30] sm:$0xff] %v470_v5 }
 0x106   :  { %510 = vst [vmem:[#allocation2 + $0x28] sm:$0xff] %v399_v8  ;;  %512 = vst.msk [vmem:[#allocation2 + $0x38] sm:$0xff] %vm507_vm1, %v472_v9 }
 0x108   :  { %v402_v10 = vpop.f32.mrb[4].mxu0  ;;  %v475_v11 = vpop.f32.mrb[4].mxu1 }
 0x109   :  { %v403_v12 = vadd.f32 %v402_v10, %v3671_v54  ;;  %v476_v13 = vadd.f32 %v475_v11, %v3675_v55  ;;  %v404_v14 = vpop.f32.mrb[5].mxu0  ;;  %v477_v15 = vpop.f32.mrb[5].mxu1 }
 0x10a   :  { %v405_v16 = vadd.f32 %v404_v14, %v3678_v56  ;;  %v478_v17 = vadd.f32 %v477_v15, %v3682_v57  ;;  %v406_v18 = vpop.f32.mrb[6].mxu0  ;;  %v479_v19 = vpop.f32.mrb[6].mxu1 }
 0x10b   :  { %513 = vst [vmem:[#allocation2 + $0x40] sm:$0xff] %v403_v12  ;;  %515 = vst [vmem:[#allocation2 + $0x50] sm:$0xff] %v476_v13  ;;  %v407_v20 = vadd.f32 %v406_v18, %v3671_v54  ;;  %v480_v21 = vadd.f32 %v479_v19, %v3675_v55  ;;  %v408_v22 = vpop.f32.mrb[7].mxu0  ;;  %v481_v23 = vpop.f32.mrb[7].mxu1 }
 0x10c   :  { %514 = vst [vmem:[#allocation2 + $0x48] sm:$0xff] %v405_v16  ;;  %516 = vst.msk [vmem:[#allocation2 + $0x58] sm:$0xff] %vm507_vm1, %v478_v17  ;;  %v409_v24 = vadd.f32 %v408_v22, %v3678_v56  ;;  %v482_v25 = vadd.f32 %v481_v23, %v3682_v57 }
 0x10d   :  { %517 = vst [vmem:[#allocation2 + $0x60] sm:$0xff] %v407_v20  ;;  %519 = vst [vmem:[#allocation2 + $0x70] sm:$0xff] %v480_v21 }
 0x10e   :  { %518 = vst [vmem:[#allocation2 + $0x68] sm:$0xff] %v409_v24  ;;  %520 = vst.msk [vmem:[#allocation2 + $0x78] sm:$0xff] %vm507_vm1, %v482_v25 }
 0x110   :  { %v412_v26 = vpop.f32.mrb[8].mxu0  ;;  %v485_v27 = vpop.f32.mrb[8].mxu1 }
 0x111   :  { %v413_v28 = vadd.f32 %v412_v26, %v3671_v54  ;;  %v486_v29 = vadd.f32 %v485_v27, %v3675_v55  ;;  %v414_v30 = vpop.f32.mrb[9].mxu0  ;;  %v487_v31 = vpop.f32.mrb[9].mxu1 }
 0x112   :  { %v415_v32 = vadd.f32 %v414_v30, %v3678_v56  ;;  %v488_v33 = vadd.f32 %v487_v31, %v3682_v57  ;;  %v416_v34 = vpop.f32.mrb[10].mxu0  ;;  %v489_v35 = vpop.f32.mrb[10].mxu1 }
 0x113   :  { %521 = vst [vmem:[#allocation2 + $0x80] sm:$0xff] %v413_v28  ;;  %523 = vst [vmem:[#allocation2 + $0x90] sm:$0xff] %v486_v29  ;;  %v417_v36 = vadd.f32 %v416_v34, %v3671_v54  ;;  %v490_v37 = vadd.f32 %v489_v35, %v3675_v55  ;;  %v418_v38 = vpop.f32.mrb[11].mxu0  ;;  %v491_v39 = vpop.f32.mrb[11].mxu1 }
 0x114   :  { %522 = vst [vmem:[#allocation2 + $0x88] sm:$0xff] %v415_v32  ;;  %524 = vst.msk [vmem:[#allocation2 + $0x98] sm:$0xff] %vm507_vm1, %v488_v33  ;;  %v419_v40 = vadd.f32 %v418_v38, %v3678_v56  ;;  %v492_v41 = vadd.f32 %v491_v39, %v3682_v57 }
 0x115   :  { %525 = vst [vmem:[#allocation2 + $0xa0] sm:$0xff] %v417_v36  ;;  %527 = vst [vmem:[#allocation2 + $0xb0] sm:$0xff] %v490_v37 }
 0x116   :  { %526 = vst [vmem:[#allocation2 + $0xa8] sm:$0xff] %v419_v40  ;;  %528 = vst.msk [vmem:[#allocation2 + $0xb8] sm:$0xff] %vm507_vm1, %v492_v41 }
 0x118   :  { %v422_v42 = vpop.f32.mrb[12].mxu0  ;;  %v495_v43 = vpop.f32.mrb[12].mxu1 }
 0x119   :  { %v423_v47 = vadd.f32 %v422_v42, %v3671_v54  ;;  %v496_v51 = vadd.f32 %v495_v43, %v3675_v55  ;;  %v424_v58 = vpop.f32.mrb[13].mxu0  ;;  %v497_v59 = vpop.f32.mrb[13].mxu1 }
 0x11a   :  { %v425_v60 = vadd.f32 %v424_v58, %v3678_v56  ;;  %v498_v61 = vadd.f32 %v497_v59, %v3682_v57  ;;  %v426_v62 = vpop.f32.mrb[14].mxu0  ;;  %v499_v63 = vpop.f32.mrb[14].mxu1 }
 0x11b   :  { %529 = vst [vmem:[#allocation2 + $0xc0] sm:$0xff] %v423_v47  ;;  %531 = vst [vmem:[#allocation2 + $0xd0] sm:$0xff] %v496_v51  ;;  %v427_v0 = vadd.f32 %v426_v62, %v3671_v54  ;;  %v500_v1 = vadd.f32 %v499_v63, %v3675_v55  ;;  %v428_v2 = vpop.f32.mrb[15].mxu0  ;;  %v501_v3 = vpop.f32.mrb[15].mxu1  ;;  %v3728_v54 = vmov 0.0   ;;  %v3730_v55 = vmov 0.0  }
 0x11c   :  { %530 = vst [vmem:[#allocation2 + $0xc8] sm:$0xff] %v425_v60  ;;  %532 = vst.msk [vmem:[#allocation2 + $0xd8] sm:$0xff] %vm507_vm1, %v498_v61  ;;  %v429_v4 = vadd.f32 %v428_v2, %v3678_v56  ;;  %v502_v5 = vadd.f32 %v501_v3, %v3682_v57 }
 0x11d   :  { %533 = vst [vmem:[#allocation2 + $0xe0] sm:$0xff] %v427_v0  ;;  %535 = vst [vmem:[#allocation2 + $0xf0] sm:$0xff] %v500_v1 }
 0x11e   :  { %534 = vst [vmem:[#allocation2 + $0xe8] sm:$0xff] %v429_v4  ;;  %536 = vst.msk [vmem:[#allocation2 + $0xf8] sm:$0xff] %vm507_vm1, %v502_v5 }
 0x11f LB: > { %s4587_s20 = sld [smem:[#allocation5_spill]]  ;;  %v897_v57 = vrot.slane %v3650_v45, %v3660_v49  ;;  %v560_v9 = vpack.c.bf16 %v3393_v55, %v3393_v55  ;;  %s3399_s30 = smov 32   ;;  %v901_v12 = vrot.slane %v3650_v45, %v3667_v52  ;;  %v561_v14 = vpack.c.bf16 %v3389_v54, %v3389_v54  ;;  %s3397_s3 = sphi %s3732_s3, %s545_s3   ;;  %v3393_v55 = vphi %v3730_v55, %v4017_v55   ;;  %v3389_v54 = vphi %v3728_v54, %v4015_v54   ;;  %v3385_v7 = vphi %v3726_v7, %v1676_v7   ;;  %v3381_v6 = vphi %v3724_v6, %v1677_v6  }
 0x120   : > { %s3400_s22 = smov 112   ;;  %vm604_vm2 = vcmask 916480   ;;  %vm906_vm3 = vcmask 261120   ;;  %s3401_s21 = smov 96   ;;  %vm918_vm4 = vcmask 785408  }
 0x121   : > { %902 = vrot.lane.b32.xlu1 %v897_v57, %s3399_s30  ;;  %600 = vrot.lane.b32.xlu0 %v560_v9, %s3400_s22  ;;  %s2684_s2 = sshll.u32 %s3397_s3, 3  ;;  %s4588_s7 = sld [smem:[#allocation6_spill]] }
 0x122   : > { %s3879_s5 = sshra.s32 %s2684_s2, 3  ;;  %s4589_s1 = sld [smem:[#allocation7_spill]] }
 0x123   : > { %s2867_s23 = sshll.u32 %s3879_s5, 5  ;;  %s545_s3 = sadd.s32 1, %s3397_s3  }
 0x124   : > { %s555_s24 = scalar_lea.vmem [#allocation2], %s2867_s23  ;;  %p542_p0 = scmp.ge.s32.totalorder %s545_s3, 8  }
 0x125   : > { %v3076_v56 = vld [vmem:[%s4587_s20 + $0x4] ss:$16 sps:$4 sm:$0xff]   ;;  %v3078_v8 = vld [vmem:[%s4587_s20 + $0xc] ss:$16 sps:$4 sm:$0xff]   ;;  %v3080_v10 = vld [vmem:[%s4587_s20] ss:$16 sps:$4 sm:$0xff]   ;;  %904 = vrot.lane.b32.xlu1 %v901_v12, %s3399_s30 }
 0x126   : > { %790 = vmatprep.subr.bf16.mxu0 %v3076_v56  ;;  %v3081_v11 = vld [vmem:[%s4587_s20 + $0x8] ss:$16 sps:$4 sm:$0xff]   ;;  %831 = vmatprep.subr.bf16.mxu1 %v3078_v8  ;;  %v3082_v13 = vld [vmem:[%s4587_s20 + $0x24] ss:$16 sps:$4 sm:$0xff]   ;;  %v3084_v15 = vld [vmem:[%s4587_s20 + $0x2c] ss:$16 sps:$4 sm:$0xff]  }
 0x127   : > { %791 = vmatpush1.bf16.msra.mxu0 %v3080_v10  ;;  %v3086_v16 = vld [vmem:[%s4587_s20 + $0x20] ss:$16 sps:$4 sm:$0xff]   ;;  %832 = vmatpush1.bf16.msra.mxu1 %v3081_v11  ;;  %v3087_v17 = vld [vmem:[%s4587_s20 + $0x28] ss:$16 sps:$4 sm:$0xff]   ;;  %v3088_v18 = vld [vmem:[%s4587_s20 + $0x44] ss:$16 sps:$4 sm:$0xff]  }
 0x128   : > { %792 = vmatprep.subr.bf16.mxu0 %v3082_v13  ;;  %833 = vmatprep.subr.bf16.mxu1 %v3084_v15  ;;  %v3090_v19 = vld [vmem:[%s4587_s20 + $0x4c] ss:$16 sps:$4 sm:$0xff]   ;;  %v3092_v20 = vld [vmem:[%s4587_s20 + $0x40] ss:$16 sps:$4 sm:$0xff]   ;;  %v3093_v21 = vld [vmem:[%s4587_s20 + $0x48] ss:$16 sps:$4 sm:$0xff]  }
 0x129   : > { %602 = vrot.lane.b32.xlu0 %v561_v14, %s3400_s22  ;;  %v3094_v22 = vld [vmem:[%s4587_s20 + $0x64] ss:$16 sps:$4 sm:$0xff]   ;;  %v3096_v23 = vld [vmem:[%s4587_s20 + $0x6c] ss:$16 sps:$4 sm:$0xff]   ;;  %v3098_v24 = vld [vmem:[%s4587_s20 + $0x60] ss:$16 sps:$4 sm:$0xff]  }
 0x12a   : > { %v3099_v25 = vld [vmem:[%s4587_s20 + $0x68] ss:$16 sps:$4 sm:$0xff]   ;;  %v3100_v26 = vld [vmem:[%s4587_s20 + $0x84] ss:$16 sps:$4 sm:$0xff]   ;;  %v3102_v27 = vld [vmem:[%s4587_s20 + $0x8c] ss:$16 sps:$4 sm:$0xff]  }
 0x12b   : > { %793 = vmatpush1.bf16.msra.mxu0 %v3086_v16  ;;  %834 = vmatpush1.bf16.msra.mxu1 %v3087_v17  ;;  %v3104_v28 = vld [vmem:[%s4587_s20 + $0x80] ss:$16 sps:$4 sm:$0xff]   ;;  %v3105_v29 = vld [vmem:[%s4587_s20 + $0x88] ss:$16 sps:$4 sm:$0xff]   ;;  %v3106_v30 = vld [vmem:[%s4587_s20 + $0xa4] ss:$16 sps:$4 sm:$0xff]  }
 0x12c   : > { %794 = vmatprep.subr.bf16.mxu0 %v3088_v18  ;;  %835 = vmatprep.subr.bf16.mxu1 %v3090_v19  ;;  %v3108_v31 = vld [vmem:[%s4587_s20 + $0xac] ss:$16 sps:$4 sm:$0xff]   ;;  %v3110_v32 = vld [vmem:[%s4587_s20 + $0xa0] ss:$16 sps:$4 sm:$0xff]   ;;  %v3111_v33 = vld [vmem:[%s4587_s20 + $0xa8] ss:$16 sps:$4 sm:$0xff]  }
 0x12d   : > { %v3112_v34 = vld [vmem:[%s4587_s20 + $0xc4] ss:$16 sps:$4 sm:$0xff]   ;;  %v3114_v35 = vld [vmem:[%s4587_s20 + $0xcc] ss:$16 sps:$4 sm:$0xff]   ;;  %v3116_v36 = vld [vmem:[%s4587_s20 + $0xc0] ss:$16 sps:$4 sm:$0xff]  }
 0x12e   : > { %v3117_v37 = vld [vmem:[%s4587_s20 + $0xc8] ss:$16 sps:$4 sm:$0xff]   ;;  %v3118_v38 = vld [vmem:[%s4587_s20 + $0xe4] ss:$16 sps:$4 sm:$0xff]   ;;  %v3120_v39 = vld [vmem:[%s4587_s20 + $0xec] ss:$16 sps:$4 sm:$0xff]  }
 0x12f   : > { %795 = vmatpush1.bf16.msra.mxu0 %v3092_v20  ;;  %836 = vmatpush1.bf16.msra.mxu1 %v3093_v21  ;;  %v3122_v40 = vld [vmem:[%s4587_s20 + $0xe0] ss:$16 sps:$4 sm:$0xff]   ;;  %v3123_v41 = vld [vmem:[%s4587_s20 + $0xe8] ss:$16 sps:$4 sm:$0xff]   ;;  %v3124_v42 = vld [vmem:[%s4587_s20 + $0x104] ss:$16 sps:$4 sm:$0xff]  }
 0x130   : > { %796 = vmatprep.subr.bf16.mxu0 %v3094_v22  ;;  %837 = vmatprep.subr.bf16.mxu1 %v3096_v23  ;;  %v3126_v43 = vld [vmem:[%s4587_s20 + $0x10c] ss:$16 sps:$4 sm:$0xff]   ;;  %v3128_v47 = vld [vmem:[%s4587_s20 + $0x100] ss:$16 sps:$4 sm:$0xff]   ;;  %v3129_v51 = vld [vmem:[%s4587_s20 + $0x108] ss:$16 sps:$4 sm:$0xff]  }
 0x131   : > { %v557_v10 = vld [vmem:[%s555_s24 + $0x8] sm:$0xff]  ;;  %v556_v11 = vld [vmem:[%s555_s24] sm:$0xff]  ;;  %v3281_v48 = vld [vmem:[%s4562_s9 + $0x30] ss:$8 sps:$4 sm:$0xff] (%p542_p0)  }
 0x132   :  { %v3278_v45 = vld [vmem:[%s4562_s9 + $0x20] ss:$8 sps:$4 sm:$0xff] (%p542_p0)  }
 0x133   : > { %797 = vmatpush1.bf16.msra.mxu0 %v3098_v24  ;;  %838 = vmatpush1.bf16.msra.mxu1 %v3099_v25 }
 0x134   : > { %798 = vmatprep.subr.bf16.mxu0 %v3100_v26  ;;  %839 = vmatprep.subr.bf16.mxu1 %v3102_v27 }
 0x137   : > { %799 = vmatpush1.bf16.msra.mxu0 %v3104_v28  ;;  %840 = vmatpush1.bf16.msra.mxu1 %v3105_v29  ;;  %v559_v28 = vld [vmem:[%s555_s24 + $0x18] sm:$0xff]  ;;  %v3888_v29 = vld [vmem:[%s555_s24 + $0x10] sm:$0xff] }
 0x138   : > { %800 = vmatprep.subr.bf16.mxu0 %v3106_v30  ;;  %841 = vmatprep.subr.bf16.mxu1 %v3108_v31 }
 0x13b   : > { %801 = vmatpush1.bf16.msra.mxu0 %v3110_v32  ;;  %842 = vmatpush1.bf16.msra.mxu1 %v3111_v33 }
 0x13c   : > { %802 = vmatprep.subr.bf16.mxu0 %v3112_v34  ;;  %843 = vmatprep.subr.bf16.mxu1 %v3114_v35  ;;  %v3130_v35 = vld [vmem:[%s4588_s7] ss:$16 sps:$4 sm:$0xff]  }
 0x13f   : > { %803 = vmatpush1.bf16.msra.mxu0 %v3116_v36  ;;  %844 = vmatpush1.bf16.msra.mxu1 %v3117_v37  ;;  %v3132_v36 = vld [vmem:[%s4588_s7 + $0x4] ss:$16 sps:$4 sm:$0xff]   ;;  %v3133_v37 = vld [vmem:[%s4588_s7 + $0x8] ss:$16 sps:$4 sm:$0xff]  }
 0x140   : > { %804 = vmatprep.subr.bf16.mxu0 %v3118_v38  ;;  %845 = vmatprep.subr.bf16.mxu1 %v3120_v39  ;;  %v3135_v39 = vld [vmem:[%s4588_s7 + $0xc] ss:$16 sps:$4 sm:$0xff]  }
 0x143   : > { %805 = vmatpush1.bf16.msra.mxu0 %v3122_v40  ;;  %846 = vmatpush1.bf16.msra.mxu1 %v3123_v41  ;;  %v3138_v40 = vld [vmem:[%s4588_s7 + $0x24] ss:$16 sps:$4 sm:$0xff]   ;;  %v3141_v41 = vld [vmem:[%s4588_s7 + $0x2c] ss:$16 sps:$4 sm:$0xff]  }
 0x144   : > { %806 = vmatprep.subr.bf16.mxu0 %v3124_v42  ;;  %847 = vmatprep.subr.bf16.mxu1 %v3126_v43  ;;  %v3136_v42 = vld [vmem:[%s4588_s7 + $0x20] ss:$16 sps:$4 sm:$0xff]   ;;  %v3139_v43 = vld [vmem:[%s4588_s7 + $0x28] ss:$16 sps:$4 sm:$0xff]  }
 0x147   : > { %807 = vmatpush1.bf16.msra.mxu0 %v3128_v47  ;;  %848 = vmatpush1.bf16.msra.mxu1 %v3129_v51  ;;  %v3144_v47 = vld [vmem:[%s4588_s7 + $0x44] ss:$16 sps:$4 sm:$0xff]   ;;  %v3147_v51 = vld [vmem:[%s4588_s7 + $0x4c] ss:$16 sps:$4 sm:$0xff]  }
 0x148   : > { %1205 = vmatprep.subr.bf16.mxu0 %v3132_v36  ;;  %1246 = vmatprep.subr.bf16.mxu1 %v3135_v39  ;;  %v1288_v39 = vpack.c.bf16 %v3381_v6, %v3381_v6 }
 0x193   : > { %v601_v58 = vpop.permute.xlu0 %600  ;;  %v903_v61 = vpop.permute.xlu1 %902 }
 0x197   : > { %v905_v62 = vpop.permute.xlu1 %904 }
 0x198   : > { %v907_v4 = vsel %vm906_vm3, %v903_v61, %v905_v62  ;;  %v3148_v62 = vld [vmem:[%s4588_s7 + $0x60] ss:$16 sps:$4 sm:$0xff]  }
 0x19b   : > { %v603_v59 = vpop.permute.xlu0 %602 }
 0x19c   : > { %2723 = vmatprep.mubr.msk.bf16.mxu0 %vm345_vm0, %v603_v59  ;;  %2724 = vmatprep.mubr.msk.bf16.mxu1 %vm345_vm0, %v603_v59  ;;  %v605_v60 = vsel %vm604_vm2, %v601_v58, %v603_v59  ;;  %v3142_v58 = vld [vmem:[%s4588_s7 + $0x40] ss:$16 sps:$4 sm:$0xff]   ;;  %v3145_v59 = vld [vmem:[%s4588_s7 + $0x48] ss:$16 sps:$4 sm:$0xff]  }
 0x19d   : > { %823 = vmatmul.mubr.bf16.vlgmr.msra.gmra.mrb[0].mxu0 %v605_v60  ;;  %864 = vmatmul.mubr.bf16.vlgmr.msra.gmra.mrb[0].mxu1 %v605_v60  ;;  %v3150_v60 = vld [vmem:[%s4588_s7 + $0x64] ss:$16 sps:$4 sm:$0xff]  }
 0x19e   : > { %1206 = vmatpush1.bf16.msra.mxu0 %v3130_v35  ;;  %1247 = vmatpush1.bf16.msra.mxu1 %v3133_v37 }
 0x19f   : > { %1207 = vmatprep.subr.bf16.mxu0 %v3138_v40  ;;  %1248 = vmatprep.subr.bf16.mxu1 %v3141_v41  ;;  %v1623_v40 = vrot.slane %v3655_v46, %v3660_v49  ;;  %v1627_v41 = vrot.slane %v3655_v46, %v3667_v52  ;;  %v3279_v46 = vld [vmem:[%s4562_s9 + $0x34] ss:$8 sps:$4 sm:$0xff] (%p542_p0)  }
 0x1a2   : > { %1208 = vmatpush1.bf16.msra.mxu0 %v3136_v42  ;;  %1249 = vmatpush1.bf16.msra.mxu1 %v3139_v43  ;;  %v3184_v43 = vld [vmem:[%s4589_s1] ss:$16 sps:$4 sm:$0xff]  }
 0x1a3   : > { %1209 = vmatprep.subr.bf16.mxu0 %v3144_v47  ;;  %1250 = vmatprep.subr.bf16.mxu1 %v3147_v51  ;;  %v3187_v47 = vld [vmem:[%s4589_s1 + $0x8] ss:$16 sps:$4 sm:$0xff]  }
 0x1a6   : > { %1210 = vmatpush1.bf16.msra.mxu0 %v3142_v58  ;;  %1251 = vmatpush1.bf16.msra.mxu1 %v3145_v59  ;;  %v3192_v58 = vld [vmem:[%s4589_s1 + $0x24] ss:$16 sps:$4 sm:$0xff]   ;;  %v3195_v59 = vld [vmem:[%s4589_s1 + $0x2c] ss:$16 sps:$4 sm:$0xff]  }
 0x1a7   : > { %1211 = vmatprep.subr.bf16.mxu0 %v3150_v60 }
 0x1aa   : > { %1212 = vmatpush1.bf16.msra.mxu0 %v3148_v62  ;;  %v3193_v62 = vld [vmem:[%s4589_s1 + $0x28] ss:$16 sps:$4 sm:$0xff]  }
 0x270   : > { %v824_v63 = vpop.f32.mrb[0].mxu0  ;;  %v3872_v0 = vpop.f32.mrb[0].mxu1 }
 0x271   : > { %v910_v1 = vadd.f32 %v903_v61, %v3872_v0  ;;  %v826_v2 = vpop.f32.mrb[1].mxu0  ;;  %v867_v3 = vpop.f32.mrb[1].mxu1  ;;  %v872_v13 = vadd.f32 %v824_v63, %v556_v11  ;;  %v3153_v61 = vld [vmem:[%s4588_s7 + $0x6c] ss:$16 sps:$4 sm:$0xff]   ;;  %v3151_v63 = vld [vmem:[%s4588_s7 + $0x68] ss:$16 sps:$4 sm:$0xff]  }
 0x272   : > { %v911_v5 = vadd.f32 %v907_v4, %v867_v3  ;;  %v828_v56 = vpop.f32.mrb[2].mxu0  ;;  %v869_v57 = vpop.f32.mrb[2].mxu1  ;;  %v873_v12 = vadd.f32 %v826_v2, %v557_v10  ;;  %1252 = vmatprep.subr.bf16.mxu1 %v3153_v61  ;;  %v3159_v2 = vld [vmem:[%s4588_s7 + $0x8c] ss:$16 sps:$4 sm:$0xff]   ;;  %v3154_v3 = vld [vmem:[%s4588_s7 + $0x80] ss:$16 sps:$4 sm:$0xff]  }
 0x273   : > { %914 = vrot.lane.b32.xlu0 %v910_v1, %s3401_s21  ;;  %v829_v8 = vpop.f32.mrb[3].mxu0  ;;  %v870_v9 = vpop.f32.mrb[3].mxu1  ;;  %v2725_v15 = vmul.f32 -1.442695, %v872_v13  ;;  %v3156_v1 = vld [vmem:[%s4588_s7 + $0x84] ss:$16 sps:$4 sm:$0xff]   ;;  %1253 = vmatpush1.bf16.msra.mxu1 %v3151_v63 }
 0x274   : > { %916 = vrot.lane.b32.xlu1 %v911_v5, %s3401_s21  ;;  %v2726_v14 = vmul.f32 -1.442695, %v873_v12  ;;  %1213 = vmatprep.subr.bf16.mxu0 %v3156_v1  ;;  %v3157_v4 = vld [vmem:[%s4588_s7 + $0x88] ss:$16 sps:$4 sm:$0xff]   ;;  %v3162_v5 = vld [vmem:[%s4588_s7 + $0xa4] ss:$16 sps:$4 sm:$0xff]  }
 0x275   : > { %1254 = vmatprep.subr.bf16.mxu1 %v3159_v2  ;;  %v3165_v56 = vld [vmem:[%s4588_s7 + $0xac] ss:$16 sps:$4 sm:$0xff]   ;;  %1214 = vmatpush1.bf16.msra.mxu0 %v3154_v3  ;;  %v3160_v57 = vld [vmem:[%s4588_s7 + $0xa0] ss:$16 sps:$4 sm:$0xff]   ;;  %v3163_v8 = vld [vmem:[%s4588_s7 + $0xa8] ss:$16 sps:$4 sm:$0xff]  }
 0x276   : > { %3238 = vpow2.f32 %v2726_v14  ;;  %1215 = vmatprep.subr.bf16.mxu0 %v3162_v5  ;;  %v3168_v9 = vld [vmem:[%s4588_s7 + $0xc4] ss:$16 sps:$4 sm:$0xff]   ;;  %v3171_v10 = vld [vmem:[%s4588_s7 + $0xcc] ss:$16 sps:$4 sm:$0xff]   ;;  %v3166_v11 = vld [vmem:[%s4588_s7 + $0xc0] ss:$16 sps:$4 sm:$0xff]  }
 0x277   : > { %3240 = vpow2.f32 %v2725_v15  ;;  %1255 = vmatpush1.bf16.msra.mxu1 %v3157_v4  ;;  %v3169_v12 = vld [vmem:[%s4588_s7 + $0xc8] ss:$16 sps:$4 sm:$0xff]   ;;  %v3174_v13 = vld [vmem:[%s4588_s7 + $0xe4] ss:$16 sps:$4 sm:$0xff]   ;;  %v3177_v14 = vld [vmem:[%s4588_s7 + $0xec] ss:$16 sps:$4 sm:$0xff]  }
 0x278   : > { %1256 = vmatprep.subr.bf16.mxu1 %v3165_v56  ;;  %v3172_v15 = vld [vmem:[%s4588_s7 + $0xe0] ss:$16 sps:$4 sm:$0xff]   ;;  %v3198_v1 = vld [vmem:[%s4589_s1 + $0x44] ss:$16 sps:$4 sm:$0xff]   ;;  %v3201_v2 = vld [vmem:[%s4589_s1 + $0x4c] ss:$16 sps:$4 sm:$0xff]  }
 0x279   : > { %1216 = vmatpush1.bf16.msra.mxu0 %v3160_v57  ;;  %v3190_v61 = vld [vmem:[%s4589_s1 + $0x20] ss:$16 sps:$4 sm:$0xff]   ;;  %v3199_v4 = vld [vmem:[%s4589_s1 + $0x48] ss:$16 sps:$4 sm:$0xff]   ;;  %v3204_v5 = vld [vmem:[%s4589_s1 + $0x64] ss:$16 sps:$4 sm:$0xff]  }
 0x27a   : > { %1217 = vmatprep.subr.bf16.mxu0 %v3168_v9  ;;  %v3196_v3 = vld [vmem:[%s4589_s1 + $0x40] ss:$16 sps:$4 sm:$0xff]   ;;  %v3207_v56 = vld [vmem:[%s4589_s1 + $0x6c] ss:$16 sps:$4 sm:$0xff]   ;;  %v3210_v9 = vld [vmem:[%s4589_s1 + $0x84] ss:$16 sps:$4 sm:$0xff]  }
 0x27b   : > { %1257 = vmatpush1.bf16.msra.mxu1 %v3163_v8  ;;  %v3202_v57 = vld [vmem:[%s4589_s1 + $0x60] ss:$16 sps:$4 sm:$0xff]   ;;  %v3205_v8 = vld [vmem:[%s4589_s1 + $0x68] ss:$16 sps:$4 sm:$0xff]  }
 0x27c   : > { %1258 = vmatprep.subr.bf16.mxu1 %v3171_v10  ;;  %v3213_v10 = vld [vmem:[%s4589_s1 + $0x8c] ss:$16 sps:$4 sm:$0xff]  }
 0x27d   : > { %1218 = vmatpush1.bf16.msra.mxu0 %v3166_v11  ;;  %v3208_v11 = vld [vmem:[%s4589_s1 + $0x80] ss:$16 sps:$4 sm:$0xff]  }
 0x27e   : > { %1219 = vmatprep.subr.bf16.mxu0 %v3174_v13  ;;  %v3216_v13 = vld [vmem:[%s4589_s1 + $0xa4] ss:$16 sps:$4 sm:$0xff]  }
 0x27f   : > { %1259 = vmatpush1.bf16.msra.mxu1 %v3169_v12  ;;  %v3211_v12 = vld [vmem:[%s4589_s1 + $0x88] ss:$16 sps:$4 sm:$0xff]  }
 0x280   : > { %v3239_v16 = vpop.eup %3238  ;;  %1260 = vmatprep.subr.bf16.mxu1 %v3177_v14  ;;  %v3219_v14 = vld [vmem:[%s4589_s1 + $0xac] ss:$16 sps:$4 sm:$0xff]  }
 0x281   : > { %v3241_v17 = vpop.eup %3240  ;;  %v881_v18 = vadd.f32 1.0, %v3239_v16  ;;  %v3175_v16 = vld [vmem:[%s4588_s7 + $0xe8] ss:$16 sps:$4 sm:$0xff]   ;;  %1220 = vmatpush1.bf16.msra.mxu0 %v3172_v15  ;;  %v3214_v15 = vld [vmem:[%s4589_s1 + $0xa0] ss:$16 sps:$4 sm:$0xff]  }
 0x282   : > { %v880_v19 = vadd.f32 1.0, %v3241_v17  ;;  %v3180_v17 = vld [vmem:[%s4588_s7 + $0x104] ss:$16 sps:$4 sm:$0xff]  }
 0x283   : > { %3242 = vrcp.f32 %v881_v18  ;;  %v3183_v18 = vld [vmem:[%s4588_s7 + $0x10c] ss:$16 sps:$4 sm:$0xff]   ;;  %1261 = vmatpush1.bf16.msra.mxu1 %v3175_v16  ;;  %1221 = vmatprep.subr.bf16.mxu0 %v3180_v17  ;;  %v3217_v16 = vld [vmem:[%s4589_s1 + $0xa8] ss:$16 sps:$4 sm:$0xff]   ;;  %v3222_v17 = vld [vmem:[%s4589_s1 + $0xc4] ss:$16 sps:$4 sm:$0xff]  }
 0x284   : > { %3244 = vrcp.f32 %v880_v19  ;;  %v3178_v19 = vld [vmem:[%s4588_s7 + $0x100] ss:$16 sps:$4 sm:$0xff]   ;;  %1262 = vmatprep.subr.bf16.mxu1 %v3183_v18  ;;  %v3225_v18 = vld [vmem:[%s4589_s1 + $0xcc] ss:$16 sps:$4 sm:$0xff]  }
 0x285   : > { %1222 = vmatpush1.bf16.msra.mxu0 %v3178_v19  ;;  %v3220_v19 = vld [vmem:[%s4589_s1 + $0xc0] ss:$16 sps:$4 sm:$0xff]  }
 0x28d   : > { %v3882_v21 = vpop.eup %3242 }
 0x28e   : > { %v3245_v23 = vpop.eup %3244  ;;  %v951_v36 = vmul.f32 %v3393_v55, %v3882_v21 }
 0x2e5   : > { %v915_v20 = vpop.permute.xlu0 %914 }
 0x2e6   : > { %v917_v22 = vpop.permute.xlu1 %916 }
 0x2e7   : > { %v919_v24 = vsel %vm918_vm4, %v915_v20, %v917_v22  ;;  %v923_v25 = vmul.f32 %v3882_v21, %v917_v22  ;;  %v3181_v20 = vld [vmem:[%s4588_s7 + $0x108] ss:$16 sps:$4 sm:$0xff]   ;;  %v886_v22 = vadd.f32 %v3872_v0, %v3888_v29  ;;  %v937_v0 = vsub.f32 1.0, %v3882_v21 }
 0x2e8   : > { %v922_v26 = vmul.f32 %v3245_v23, %v919_v24  ;;  %1263 = vmatpush1.bf16.msra.mxu1 %v3181_v20  ;;  %v1287_v21 = vpack.c.bf16 %v3385_v7, %v3385_v7  ;;  %v3223_v20 = vld [vmem:[%s4589_s1 + $0xc8] ss:$16 sps:$4 sm:$0xff]  }
 0x2e9   : > { %928 = vrot.lane.b32.xlu1 %v923_v25, %s3399_s30  ;;  %v2727_v23 = vmul.f32 -1.442695, %v886_v22  ;;  %v3228_v22 = vld [vmem:[%s4589_s1 + $0xe4] ss:$16 sps:$4 sm:$0xff]  }
 0x2ea   : > { %926 = vrot.lane.b32.xlu0 %v922_v26, %s3399_s30  ;;  %v3186_v26 = vld [vmem:[%s4589_s1 + $0x4] ss:$16 sps:$4 sm:$0xff]  }
 0x2eb   : > { %1516 = vmatprep.subr.bf16.mxu0 %v3186_v26  ;;  %v3234_v26 = vld [vmem:[%s4589_s1 + $0x104] ss:$16 sps:$4 sm:$0xff]  }
 0x35b   : > { %v929_v27 = vpop.permute.xlu1 %928 }
 0x35c   : > { %v927_v30 = vpop.permute.xlu0 %926 }
 0x35d   : > { %v930_v31 = vsel %vm906_vm3, %v927_v30, %v929_v27  ;;  %v933_v32 = vadd.f32 %v927_v30, %v3888_v29  ;;  %v3189_v27 = vld [vmem:[%s4589_s1 + $0xc] ss:$16 sps:$4 sm:$0xff]  }
 0x35e   : > { %v934_v33 = vadd.f32 %v930_v31, %v559_v28  ;;  %1557 = vmatprep.subr.bf16.mxu1 %v3189_v27  ;;  %v3237_v27 = vld [vmem:[%s4589_s1 + $0x10c] ss:$16 sps:$4 sm:$0xff]  }
 0x35f   : > { %3246 = vtanh.f32 %v933_v32 }
 0x360   : > { %3248 = vtanh.f32 %v934_v33 }
 0x361   : > { %3250 = vpow2.f32 %v2727_v23  ;;  %v3231_v23 = vld [vmem:[%s4589_s1 + $0xec] ss:$16 sps:$4 sm:$0xff]  }
 0x369   : > { %v3247_v34 = vpop.eup %3246 }
 0x36a   : > { %v3249_v38 = vpop.eup %3248  ;;  %941 = vrot.lane.b32.xlu0 %v3247_v34, %s3400_s22 }
 0x36b   : > { %943 = vrot.lane.b32.xlu1 %v3249_v38, %s3400_s22  ;;  %v3251_v24 = vpop.eup %3250 }
 0x36c   : > { %v890_v25 = vadd.f32 1.0, %v3251_v24  ;;  %v3226_v24 = vld [vmem:[%s4589_s1 + $0xe0] ss:$16 sps:$4 sm:$0xff]  }
 0x36e   : > { %3252 = vrcp.f32 %v890_v25  ;;  %v3229_v25 = vld [vmem:[%s4589_s1 + $0xe8] ss:$16 sps:$4 sm:$0xff]  }
 0x378   : > { %v3253_v28 = vpop.eup %3252 }
 0x379   : > { %v938_v31 = vsub.f32 1.0, %v3253_v28  ;;  %v952_v32 = vmul.f32 %v3389_v54, %v3253_v28  ;;  %v3232_v28 = vld [vmem:[%s4589_s1 + $0x100] ss:$16 sps:$4 sm:$0xff]  }
 0x3dc   : > { %v942_v30 = vpop.permute.xlu0 %941 }
 0x3dd   : > { %v944_v29 = vpop.permute.xlu1 %943 }
 0x3de   : > { %v946_v33 = vsel %vm604_vm2, %v942_v30, %v944_v29  ;;  %v950_v34 = vmul.f32 %v944_v29, %v938_v31  ;;  %v3235_v30 = vld [vmem:[%s4589_s1 + $0x108] ss:$16 sps:$4 sm:$0xff]  }
 0x3df   : > { %v949_v35 = vmul.f32 %v946_v33, %v937_v0 }
 0x3e0   : > { %v4015_v54 = vadd.f32 %v952_v32, %v950_v34  }
 0x3e1   : > { %v4017_v55 = vadd.f32 %v951_v36, %v949_v35  }
 0x3e2   : > { %v956_v37 = vpack.c.bf16 %v4015_v54, %v4015_v54  ;;  %v3284_v54 = vld [vmem:[%s4562_s9 + $0x40] ss:$8 sps:$4 sm:$0xff] (%p542_p0)  }
 0x3e3   : > { %v955_v38 = vpack.c.bf16 %v4017_v55, %v4017_v55  ;;  %v3275_v55 = vld [vmem:[%s4562_s9 + $0x10] ss:$8 sps:$4 sm:$0xff] (%p542_p0)  }
 0x3e4   : > { %1018 = vrot.lane.b32.xlu1 %v956_v37, %s3400_s22 }
 0x3e5   : > { %1016 = vrot.lane.b32.xlu0 %v955_v38, %s3400_s22 }
 0x3e8   : > { %1329 = vrot.lane.b32.xlu1 %v1288_v39, %s3400_s22 }
 0x3e9   : > { %1327 = vrot.lane.b32.xlu0 %v1287_v21, %s3400_s22 }
 0x3ec   : > { %1630 = vrot.lane.b32.xlu1 %v1627_v41, %s3399_s30 }
 0x3ed   : > { %1628 = vrot.lane.b32.xlu0 %v1623_v40, %s3399_s30 }
 0x456   : > { %v1019_v42 = vpop.permute.xlu1 %1018 }
 0x457   : > { %2764 = vmatprep.mubr.msk.bf16.mxu0 %vm345_vm0, %v1019_v42  ;;  %2765 = vmatprep.mubr.msk.bf16.mxu1 %vm345_vm0, %v1019_v42  ;;  %v1017_v51 = vpop.permute.xlu0 %1016 }
 0x458   : > { %v1020_v60 = vsel %vm604_vm2, %v1017_v51, %v1019_v42 }
 0x459   : > { %1238 = vmatmul.mubr.bf16.vlgmr.msra.gmra.mrb[4].mxu0 %v1020_v60  ;;  %1279 = vmatmul.mubr.bf16.vlgmr.msra.gmra.mrb[4].mxu1 %v1020_v60  ;;  %v997_v60 = vrot.slane %v3645_v44, %v3660_v49 }
 0x45a   : > { %1517 = vmatpush1.bf16.msra.mxu0 %v3184_v43  ;;  %1558 = vmatpush1.bf16.msra.mxu1 %v3187_v47  ;;  %v4058_v63 = vpop.permute.xlu1 %1329 }
 0x45b   : > { %1518 = vmatprep.subr.bf16.mxu0 %v3192_v58  ;;  %1559 = vmatprep.subr.bf16.mxu1 %v3195_v59  ;;  %v1328_v31 = vpop.permute.xlu0 %1327  ;;  %v1001_v59 = vrot.slane %v3645_v44, %v3667_v52 }
 0x45c   : > { %2802 = vmatprep.mubr.msk.bf16.mxu0 %vm345_vm0, %v4058_v63  ;;  %2803 = vmatprep.mubr.msk.bf16.mxu1 %vm345_vm0, %v4058_v63  ;;  %v1331_v0 = vsel %vm604_vm2, %v1328_v31, %v4058_v63 }
 0x45e   : > { %1519 = vmatpush1.bf16.msra.mxu0 %v3190_v61  ;;  %1560 = vmatpush1.bf16.msra.mxu1 %v3193_v62  ;;  %v1631_v36 = vpop.permute.xlu1 %1630 }
 0x45f   : > { %1520 = vmatprep.subr.bf16.mxu0 %v3198_v1  ;;  %1561 = vmatprep.subr.bf16.mxu1 %v3201_v2  ;;  %v1629_v35 = vpop.permute.xlu0 %1628 }
 0x460   : > { %v1632_v37 = vsel %vm906_vm3, %v1629_v35, %v1631_v36 }
 0x462   : > { %1521 = vmatpush1.bf16.msra.mxu0 %v3196_v3  ;;  %1562 = vmatpush1.bf16.msra.mxu1 %v3199_v4 }
 0x463   : > { %1522 = vmatprep.subr.bf16.mxu0 %v3204_v5  ;;  %1563 = vmatprep.subr.bf16.mxu1 %v3207_v56 }
 0x466   : > { %1523 = vmatpush1.bf16.msra.mxu0 %v3202_v57  ;;  %1564 = vmatpush1.bf16.msra.mxu1 %v3205_v8 }
 0x467   : > { %1524 = vmatprep.subr.bf16.mxu0 %v3210_v9  ;;  %1565 = vmatprep.subr.bf16.mxu1 %v3213_v10 }
 0x46a   : > { %1525 = vmatpush1.bf16.msra.mxu0 %v3208_v11  ;;  %1566 = vmatpush1.bf16.msra.mxu1 %v3211_v12 }
 0x46b   : > { %1526 = vmatprep.subr.bf16.mxu0 %v3216_v13  ;;  %1567 = vmatprep.subr.bf16.mxu1 %v3219_v14  ;;  %v1005_v13 = vrot.slane %v3645_v44, %v119_v50  ;;  %v1009_v14 = vrot.slane %v3645_v44, %v123_v53  ;;  %v3276_v44 = vld [vmem:[%s4562_s9 + $0x24] ss:$8 sps:$4 sm:$0xff] (%p542_p0)  }
 0x46c   :  { %v3282_v50 = vld [vmem:[%s4562_s9 + $0x44] ss:$8 sps:$4 sm:$0xff] (%p542_p0)  }
 0x46e   : > { %1527 = vmatpush1.bf16.msra.mxu0 %v3214_v15  ;;  %1568 = vmatpush1.bf16.msra.mxu1 %v3217_v16 }
 0x46f   : > { %1528 = vmatprep.subr.bf16.mxu0 %v3222_v17  ;;  %1569 = vmatprep.subr.bf16.mxu1 %v3225_v18 }
 0x472   : > { %1529 = vmatpush1.bf16.msra.mxu0 %v3220_v19  ;;  %1570 = vmatpush1.bf16.msra.mxu1 %v3223_v20 }
 0x473   : > { %1530 = vmatprep.subr.bf16.mxu0 %v3228_v22  ;;  %1571 = vmatprep.subr.bf16.mxu1 %v3231_v23 }
 0x476   : > { %1531 = vmatpush1.bf16.msra.mxu0 %v3226_v24  ;;  %1572 = vmatpush1.bf16.msra.mxu1 %v3229_v25 }
 0x477   : > { %1532 = vmatprep.subr.bf16.mxu0 %v3234_v26  ;;  %1573 = vmatprep.subr.bf16.mxu1 %v3237_v27 }
 0x47a   : > { %1533 = vmatpush1.bf16.msra.mxu0 %v3232_v28  ;;  %1574 = vmatpush1.bf16.msra.mxu1 %v3235_v30 }
 0x47d   : > { %1549 = vmatmul.mubr.bf16.vlgmr.msra.gmra.mrb[4].mxu0 %v1331_v0  ;;  %1590 = vmatmul.mubr.bf16.vlgmr.msra.gmra.mrb[8].mxu1 %v1331_v0 }
 0x52c   : > { %v1280_v29 = vpop.f32.mrb[4].mxu1 }
 0x52d   : > { %v1282_v32 = vpop.f32.mrb[5].mxu1  ;;  %v1281_v15 = vadd.f32 %v1280_v29, %v1005_v13 }
 0x52e   : > { %v1284_v33 = vpop.f32.mrb[6].mxu1  ;;  %v1283_v17 = vadd.f32 %v1282_v32, %v1009_v14 }
 0x52f   : > { %v1285_v34 = vpop.f32.mrb[7].mxu1 }
 0x550   : > { %v1550_v38 = vpop.f32.mrb[4].mxu0  ;;  %v1591_v39 = vpop.f32.mrb[8].mxu1 }
 0x551   : > { %v1635_v21 = vadd.f32 %v1629_v35, %v1591_v39  ;;  %v1552_v40 = vpop.f32.mrb[5].mxu0  ;;  %v1593_v41 = vpop.f32.mrb[9].mxu1  ;;  %v2945_v62 = vadd.f32 %v1550_v38, %v997_v60  ;;  %v1612_v25 = vadd.f32 %v1591_v39, %v1281_v15  ;;  %v3293_v60 = vld [vmem:[%s4562_s9 + $0x70] ss:$8 sps:$4 sm:$0xff] (%p542_p0)  }
 0x552   : > { %v1636_v42 = vadd.f32 %v1632_v37, %v1593_v41  ;;  %v1554_v43 = vpop.f32.mrb[6].mxu0  ;;  %v1595_v47 = vpop.f32.mrb[10].mxu1  ;;  %v2946_v61 = vadd.f32 %v1552_v40, %v1001_v59  ;;  %v3270_v40 = vld [vmem:[%s4562_s9 + $0x4] ss:$8 sps:$4 sm:$0xff] (%p542_p0)   ;;  %v3272_v41 = vld [vmem:[%s4562_s9] ss:$8 sps:$4 sm:$0xff] (%p542_p0)  }
 0x553   : > { %1639 = vrot.lane.b32.xlu0 %v1635_v21, %s3401_s21  ;;  %v1555_v51 = vpop.f32.mrb[7].mxu0  ;;  %v1596_v58 = vpop.f32.mrb[11].mxu1  ;;  %v2804_v1 = vmul.f32 -1.442695, %v2945_v62  ;;  %v2806_v26 = vmul.f32 -1.442695, %v1612_v25  ;;  %1848 = vmatprep.subr.bf16.mxu0 (%p542_p0), %v3270_v40 }
 0x554   : > { %1641 = vrot.lane.b32.xlu1 %v1636_v42, %s3401_s21  ;;  %v2805_v63 = vmul.f32 -1.442695, %v2946_v61  ;;  %v3273_v42 = vld [vmem:[%s4562_s9 + $0x14] ss:$8 sps:$4 sm:$0xff] (%p542_p0)   ;;  %1849 = vmatpush1.bf16.msra.mxu0 (%p542_p0), %v3272_v41  ;;  %v3287_v47 = vld [vmem:[%s4562_s9 + $0x50] ss:$8 sps:$4 sm:$0xff] (%p542_p0)  }
 0x555   :  { %1850 = vmatprep.subr.bf16.mxu0 (%p542_p0), %v3273_v42  ;;  %v3285_v43 = vld [vmem:[%s4562_s9 + $0x54] ss:$8 sps:$4 sm:$0xff] (%p542_p0)   ;;  %v3288_v51 = vld [vmem:[%s4562_s9 + $0x64] ss:$8 sps:$4 sm:$0xff] (%p542_p0)   ;;  %v3290_v58 = vld [vmem:[%s4562_s9 + $0x60] ss:$8 sps:$4 sm:$0xff] (%p542_p0)  }
 0x556   : > { %3254 = vpow2.f32 %v2805_v63  ;;  %v3291_v59 = vld [vmem:[%s4562_s9 + $0x74] ss:$8 sps:$4 sm:$0xff] (%p542_p0)   ;;  %v3294_v61 = vld [vmem:[%s4562_s9 + $0x84] ss:$8 sps:$4 sm:$0xff] (%p542_p0)   ;;  %v3296_v62 = vld [vmem:[%s4562_s9 + $0x80] ss:$8 sps:$4 sm:$0xff] (%p542_p0)  }
 0x557   : > { %3256 = vpow2.f32 %v2804_v1  ;;  %v3300_v25 = vld [vmem:[%s4566_s13 + $0x8] sm:$0xff] (%p542_p0)  }
 0x558   :  { %1851 = vmatpush1.bf16.msra.mxu0 (%p542_p0), %v3275_v55 }
 0x559   :  { %1852 = vmatprep.subr.bf16.mxu0 (%p542_p0), %v3276_v44 }
 0x55c   :  { %1853 = vmatpush1.bf16.msra.mxu0 (%p542_p0), %v3278_v45 }
 0x55d   :  { %1854 = vmatprep.subr.bf16.mxu0 (%p542_p0), %v3279_v46 }
 0x560   : > { %v3255_v2 = vpop.eup %3254  ;;  %1855 = vmatpush1.bf16.msra.mxu0 (%p542_p0), %v3281_v48 }
 0x561   : > { %v3257_v3 = vpop.eup %3256  ;;  %v1607_v4 = vadd.f32 1.0, %v3255_v2  ;;  %1856 = vmatprep.subr.bf16.mxu0 (%p542_p0), %v3282_v50 }
 0x562   : > { %v1606_v5 = vadd.f32 1.0, %v3257_v3 }
 0x563   : > { %3258 = vrcp.f32 %v1607_v4 }
 0x564   : > { %3260 = vrcp.f32 %v1606_v5  ;;  %1857 = vmatpush1.bf16.msra.mxu0 (%p542_p0), %v3284_v54 }
 0x565   :  { %1858 = vmatprep.subr.bf16.mxu0 (%p542_p0), %v3285_v43 }
 0x568   :  { %1859 = vmatpush1.bf16.msra.mxu0 (%p542_p0), %v3287_v47 }
 0x569   :  { %1860 = vmatprep.subr.bf16.mxu0 (%p542_p0), %v3288_v51 }
 0x56c   :  { %1861 = vmatpush1.bf16.msra.mxu0 (%p542_p0), %v3290_v58 }
 0x56d   : > { %v3259_v57 = vpop.eup %3258  ;;  %1862 = vmatprep.subr.bf16.mxu0 (%p542_p0), %v3291_v59 }
 0x56e   : > { %v3261_v9 = vpop.eup %3260  ;;  %v1661_v29 = vsub.f32 1.0, %v3259_v57  ;;  %v1674_v37 = vmul.f32 %v3385_v7, %v3259_v57 }
 0x570   :  { %1863 = vmatpush1.bf16.msra.mxu0 (%p542_p0), %v3293_v60 }
 0x571   :  { %1864 = vmatprep.subr.bf16.mxu0 (%p542_p0), %v3294_v61 }
 0x574   :  { %1865 = vmatpush1.bf16.msra.mxu0 (%p542_p0), %v3296_v62 }
 0x5c5   : > { %v1640_v56 = vpop.permute.xlu0 %1639 }
 0x5c6   : > { %v1642_v8 = vpop.permute.xlu1 %1641 }
 0x5c7   : > { %v1643_v10 = vsel %vm918_vm4, %v1640_v56, %v1642_v8  ;;  %v1647_v11 = vmul.f32 %v3259_v57, %v1642_v8 }
 0x5c8   : > { %v1646_v12 = vmul.f32 %v3261_v9, %v1643_v10 }
 0x5c9   : > { %1652 = vrot.lane.b32.xlu1 %v1647_v11, %s3399_s30 }
 0x5ca   : > { %1650 = vrot.lane.b32.xlu0 %v1646_v12, %s3399_s30  ;;  %s2868_s30 = sshll.u32 %s3879_s5, 4 }
 0x5cb   : > { %s1689_s21 = scalar_lea.vmem [#allocation3], %s2868_s30 }
 0x63b   : > { %v1653_v16 = vpop.permute.xlu1 %1652 }
 0x63c   : > { %v1651_v18 = vpop.permute.xlu0 %1650 }
 0x63d   : > { %v1654_v19 = vsel %vm906_vm3, %v1651_v18, %v1653_v16  ;;  %v1657_v20 = vadd.f32 %v1651_v18, %v1281_v15 }
 0x63e   : > { %v1658_v22 = vadd.f32 %v1654_v19, %v1283_v17 }
 0x63f   : > { %3262 = vtanh.f32 %v1657_v20 }
 0x640   : > { %3264 = vtanh.f32 %v1658_v22  ;;  %v3297_v22 = vld [vmem:[%s4566_s13 + $0x40] sm:$0xff] (%p542_p0)  }
 0x641   : > { %3266 = vpow2.f32 %v2806_v26  ;;  %2869 = vmatprep.subr.bf16.mxu1 (%p542_p0), %v3297_v22  ;;  %v3301_v26 = vld [vmem:[%s4566_s13 + $0x50] sm:$0xff] (%p542_p0)  }
 0x649   : > { %v3263_v23 = vpop.eup %3262 }
 0x64a   : > { %v3265_v24 = vpop.eup %3264  ;;  %1665 = vrot.lane.b32.xlu0 %v3263_v23, %s3400_s22  ;;  %v3298_v23 = vld [vmem:[%s4566_s13] sm:$0xff] (%p542_p0)  }
 0x64b   : > { %1667 = vrot.lane.b32.xlu1 %v3265_v24, %s3400_s22  ;;  %v3267_v27 = vpop.eup %3266  ;;  %2870 = vmatpush3.bf16.msra.mxu1 (%p542_p0), %v3298_v23  ;;  %v3299_v24 = vld [vmem:[%s4566_s13 + $0x48] sm:$0xff] (%p542_p0)  }
 0x64c   : > { %v1616_v28 = vadd.f32 1.0, %v3267_v27  ;;  %2871 = vmatprep.subr.bf16.mxu1 (%p542_p0), %v3299_v24  ;;  %v3302_v27 = vld [vmem:[%s4566_s13 + $0x10] sm:$0xff] (%p542_p0)  }
 0x64e   : > { %3268 = vrcp.f32 %v1616_v28  ;;  %v3303_v28 = vld [vmem:[%s4566_s13 + $0x58] sm:$0xff] (%p542_p0)  }
 0x64f   :  { %2872 = vmatpush3.bf16.msra.mxu1 (%p542_p0), %v3300_v25 }
 0x650   :  { %2873 = vmatprep.subr.bf16.mxu1 (%p542_p0), %v3301_v26 }
 0x653   :  { %2874 = vmatpush3.bf16.msra.mxu1 (%p542_p0), %v3302_v27 }
 0x654   :  { %2875 = vmatprep.subr.bf16.mxu1 (%p542_p0), %v3303_v28 }
 0x658   : > { %v3269_v30 = vpop.eup %3268 }
 0x659   : > { %v1662_v0 = vsub.f32 1.0, %v3269_v30  ;;  %v1675_v33 = vmul.f32 %v3381_v6, %v3269_v30  ;;  %v3304_v30 = vld [vmem:[%s4566_s13 + $0x18] sm:$0xff] (%p542_p0)  }
 0x65a   :  { %2876 = vmatpush3.bf16.msra.mxu1 (%p542_p0), %v3304_v30 }
 0x6bc   : > { %v1666_v31 = vpop.permute.xlu0 %1665 }
 0x6bd   : > { %v1668_v32 = vpop.permute.xlu1 %1667 }
 0x6be   : > { %v1669_v34 = vsel %vm604_vm2, %v1666_v31, %v1668_v32  ;;  %v1673_v35 = vmul.f32 %v1668_v32, %v1662_v0  ;;  %v3305_v31 = vld [vmem:[%s4566_s13 + $0x60] sm:$0xff] (%p542_p0)   ;;  %v3308_v32 = vld [vmem:[%s4566_s13 + $0x28] sm:$0xff] (%p542_p0)  }
 0x6bf   : > { %v1672_v36 = vmul.f32 %v1669_v34, %v1661_v29  ;;  %v3306_v0 = vld [vmem:[%s4566_s13 + $0x20] sm:$0xff] (%p542_p0)   ;;  %2877 = vmatprep.subr.bf16.mxu1 (%p542_p0), %v3305_v31  ;;  %v3307_v29 = vld [vmem:[%s4566_s13 + $0x68] sm:$0xff] (%p542_p0)   ;;  %v3310_v34 = vld [vmem:[%s4566_s13 + $0x30] sm:$0xff] (%p542_p0)  }
 0x6c0   : > { %v1677_v6 = vadd.f32 %v1675_v33, %v1673_v35   ;;  %2878 = vmatpush3.bf16.msra.mxu1 (%p542_p0), %v3306_v0  ;;  %v3309_v33 = vld [vmem:[%s4566_s13 + $0x70] sm:$0xff] (%p542_p0)   ;;  %v3311_v35 = vld [vmem:[%s4566_s13 + $0x78] sm:$0xff] (%p542_p0)  }
 0x6c1   : > { %v1676_v7 = vadd.f32 %v1674_v37, %v1672_v36   ;;  %2879 = vmatprep.subr.bf16.mxu1 (%p542_p0), %v3307_v29  ;;  %v3312_v36 = vld [vmem:[%s4566_s13 + $0x38] sm:$0xff] (%p542_p0)   ;;  %v1734_v37 = vld [vmem:[%s4563_s10] sm:$0x3] (%p542_p0) }
 0x6c2   : > { %1682 = vrot.lane.b32.xlu1 %v1677_v6, %s3400_s22 }
 0x6c3   : > { %1680 = vrot.lane.b32.xlu0 %v1676_v7, %s3400_s22 }
 0x6c4   :  { %2880 = vmatpush3.bf16.msra.mxu1 (%p542_p0), %v3308_v32 }
 0x6c5   :  { %2881 = vmatprep.subr.bf16.mxu1 (%p542_p0), %v3309_v33 }
 0x6c8   :  { %2882 = vmatpush3.bf16.msra.mxu1 (%p542_p0), %v3310_v34 }
 0x6c9   :  { %2883 = vmatprep.subr.bf16.mxu1 (%p542_p0), %v3311_v35 }
 0x6cc   :  { %2884 = vmatpush3.bf16.msra.mxu1 (%p542_p0), %v3312_v36 }
 0x731   :  { %544 = sbr.rel (!%p542_p0) target bundleno = 287 (0x11f), region = 105 }
 0x734   : > { %v1683_v38 = vpop.permute.xlu1 %1682 }
 0x735   : > { %1691 = vst.msk [vmem:[%s1689_s21 + $0x8] sm:$0xff] %vm345_vm0, %v1683_v38  ;;  %v1681_v39 = vpop.permute.xlu0 %1680 }
 0x736   : > { %v1684_v21 = vsel %vm604_vm2, %v1681_v39, %v1683_v38  ;;  %v4300_v38 = vrot.slane (%p542_p0), %v1734_v37, %v3660_v49  ;;  %v4303_v39 = vrot.slane (%p542_p0), %v1734_v37, %v3667_v52 }
 0x737   : > { %1690 = vst [vmem:[%s1689_s21] sm:$0xff] %v1684_v21 }
 0x73e   :  { %v1693_v53 = vld [vmem:[#allocation3 + $0x8] sm:$0xff]  ;;  %v1695_v6 = vld [vmem:[#allocation3 + $0x18] sm:$0xff]  ;;  %v1692_v63 = vld [vmem:[#allocation3] sm:$0xff] }
 0x73f   :  { %v1709_v7 = vpack.c.bf16 %v1695_v6, %v1693_v53  ;;  %v1694_v1 = vld [vmem:[#allocation3 + $0x10] sm:$0xff]  ;;  %v1697_v2 = vld [vmem:[#allocation3 + $0x28] sm:$0xff]  ;;  %v1699_v3 = vld [vmem:[#allocation3 + $0x38] sm:$0xff] }
 0x740   :  { %v1708_v4 = vpack.c.bf16 %v1694_v1, %v1692_v63  ;;  %v1711_v5 = vpack.c.bf16 %v1699_v3, %v1697_v2  ;;  %v1696_v56 = vld [vmem:[#allocation3 + $0x20] sm:$0xff]  ;;  %v1698_v57 = vld [vmem:[#allocation3 + $0x30] sm:$0xff]  ;;  %v1701_v8 = vld [vmem:[#allocation3 + $0x48] sm:$0xff] }
 0x741   :  { %2827 = vmatprep.mubr.msk.bf16.mxu0 %vm345_vm0, %v1709_v7  ;;  %v1703_v9 = vld [vmem:[#allocation3 + $0x58] sm:$0xff]  ;;  %v1710_v10 = vpack.c.bf16 %v1698_v57, %v1696_v56  ;;  %v1700_v12 = vld [vmem:[#allocation3 + $0x40] sm:$0xff]  ;;  %v1702_v13 = vld [vmem:[#allocation3 + $0x50] sm:$0xff] }
 0x742   :  { %1881 = vmatmul.mubr.bf16.vlgmr.msra.gmra.mrb[0].mxu0 %v1708_v4  ;;  %v1713_v11 = vpack.c.bf16 %v1703_v9, %v1701_v8  ;;  %v1705_v14 = vld [vmem:[#allocation3 + $0x68] sm:$0xff]  ;;  %v1707_v15 = vld [vmem:[#allocation3 + $0x78] sm:$0xff]  ;;  %v1712_v16 = vpack.c.bf16 %v1702_v13, %v1700_v12  ;;  %v1704_v18 = vld [vmem:[#allocation3 + $0x60] sm:$0xff] }
 0x743   :  { %2828 = vmatprep.mubr.msk.bf16.mxu0 %vm345_vm0, %v1711_v5  ;;  %v1715_v17 = vpack.c.bf16 %v1707_v15, %v1705_v14  ;;  %v1706_v19 = vld [vmem:[#allocation3 + $0x70] sm:$0xff] }
 0x744   :  { %v1714_v20 = vpack.c.bf16 %v1706_v19, %v1704_v18 }
 0x74a   :  { %1891 = vmatmul.mubr.bf16.gmra.mrb[4].mxu0 %v1710_v10 }
 0x74b   :  { %2829 = vmatprep.mubr.msk.bf16.mxu0 %vm345_vm0, %v1713_v11 }
 0x752   :  { %1901 = vmatmul.mubr.bf16.gmra.mrb[8].mxu0 %v1712_v16 }
 0x753   :  { %2830 = vmatprep.mubr.msk.bf16.mxu0 %vm345_vm0, %v1715_v17 }
 0x75a   :  { %1911 = vmatmul.mubr.bf16.gmra.mrb[12].mxu0 %v1714_v20 }
 0x815   :  { %v1882_v21 = vpop.f32.mrb[0].mxu0 }
 0x816   :  { %v4306_v40 = vadd.f32 %v1882_v21, %v4300_v38  ;;  %v1884_v41 = vpop.f32.mrb[1].mxu0 }
 0x817   :  { %v4309_v42 = vadd.f32 %v1884_v41, %v4303_v39  ;;  %v1886_v55 = vpop.f32.mrb[2].mxu0 }
 0x818   :  { %v4312_v44 = vadd.f32 %v1886_v55, %v4300_v38  ;;  %v1888_v45 = vpop.f32.mrb[3].mxu0  ;;  %v1952_v48 = vmul.f32 %v4306_v40, %v4306_v40 }
 0x819   :  { %v4315_v46 = vadd.f32 %v1888_v45, %v4303_v39  ;;  %v1953_v6 = vmul.f32 %v4309_v42, %v4309_v42 }
 0x81a   :  { %v1923_v50 = vadd.f32 %v4312_v44, %v4306_v40  ;;  %v1954_v53 = vmul.f32 %v4312_v44, %v4312_v44 }
 0x81b   :  { %v1936_v7 = vadd.f32 %v4315_v46, %v4309_v42  ;;  %v1955_v54 = vmul.f32 %v4315_v46, %v4315_v46 }
 0x81c   :  { %v1968_v43 = vadd.f32 %v1954_v53, %v1952_v48 }
 0x81d   :  { %v1981_v47 = vadd.f32 %v1955_v54, %v1953_v6  ;;  %v1892_v51 = vpop.f32.mrb[4].mxu0 }
 0x81e   :  { %v4330_v58 = vadd.f32 %v1892_v51, %v4300_v38  ;;  %v1894_v59 = vpop.f32.mrb[5].mxu0 }
 0x81f   :  { %v4333_v60 = vadd.f32 %v1894_v59, %v4303_v39  ;;  %v1896_v61 = vpop.f32.mrb[6].mxu0 }
 0x820   :  { %v1924_v62 = vadd.f32 %v1923_v50, %v4330_v58  ;;  %v1956_v63 = vmul.f32 %v4330_v58, %v4330_v58  ;;  %v4339_v1 = vadd.f32 %v1896_v61, %v4300_v38  ;;  %v1898_v2 = vpop.f32.mrb[7].mxu0 }
 0x821   :  { %v1937_v3 = vadd.f32 %v1936_v7, %v4333_v60  ;;  %v1957_v4 = vmul.f32 %v4333_v60, %v4333_v60  ;;  %v4345_v5 = vadd.f32 %v1898_v2, %v4303_v39 }
 0x822   :  { %v1969_v56 = vadd.f32 %v1968_v43, %v1956_v63  ;;  %v1925_v57 = vadd.f32 %v1924_v62, %v4339_v1  ;;  %v1958_v8 = vmul.f32 %v4339_v1, %v4339_v1 }
 0x823   :  { %v1982_v9 = vadd.f32 %v1981_v47, %v1957_v4  ;;  %v1938_v10 = vadd.f32 %v1937_v3, %v4345_v5  ;;  %v1959_v11 = vmul.f32 %v4345_v5, %v4345_v5 }
 0x824   :  { %v1970_v12 = vadd.f32 %v1969_v56, %v1958_v8 }
 0x825   :  { %v1983_v13 = vadd.f32 %v1982_v9, %v1959_v11  ;;  %v1902_v14 = vpop.f32.mrb[8].mxu0 }
 0x826   :  { %v4354_v15 = vadd.f32 %v1902_v14, %v4300_v38  ;;  %v1904_v16 = vpop.f32.mrb[9].mxu0 }
 0x827   :  { %v4357_v17 = vadd.f32 %v1904_v16, %v4303_v39  ;;  %v1906_v18 = vpop.f32.mrb[10].mxu0 }
 0x828   :  { %v1926_v19 = vadd.f32 %v1925_v57, %v4354_v15  ;;  %v1960_v20 = vmul.f32 %v4354_v15, %v4354_v15  ;;  %v4363_v22 = vadd.f32 %v1906_v18, %v4300_v38  ;;  %v1908_v23 = vpop.f32.mrb[11].mxu0 }
 0x829   :  { %v1939_v24 = vadd.f32 %v1938_v10, %v4357_v17  ;;  %v1961_v25 = vmul.f32 %v4357_v17, %v4357_v17  ;;  %v4369_v26 = vadd.f32 %v1908_v23, %v4303_v39 }
 0x82a   :  { %v1971_v27 = vadd.f32 %v1970_v12, %v1960_v20  ;;  %v1927_v28 = vadd.f32 %v1926_v19, %v4363_v22  ;;  %v1962_v30 = vmul.f32 %v4363_v22, %v4363_v22 }
 0x82b   :  { %v1984_v31 = vadd.f32 %v1983_v13, %v1961_v25  ;;  %v1940_v0 = vadd.f32 %v1939_v24, %v4369_v26  ;;  %v1963_v29 = vmul.f32 %v4369_v26, %v4369_v26 }
 0x82c   :  { %v1972_v32 = vadd.f32 %v1971_v27, %v1962_v30 }
 0x82d   :  { %v1985_v33 = vadd.f32 %v1984_v31, %v1963_v29  ;;  %v1912_v34 = vpop.f32.mrb[12].mxu0 }
 0x82e   :  { %v4378_v35 = vadd.f32 %v1912_v34, %v4300_v38  ;;  %v1914_v36 = vpop.f32.mrb[13].mxu0 }
 0x82f   :  { %v4381_v37 = vadd.f32 %v1914_v36, %v4303_v39  ;;  %v1916_v21 = vpop.f32.mrb[14].mxu0 }
 0x830   :  { %v1928_v41 = vadd.f32 %v1927_v28, %v4378_v35  ;;  %v1964_v55 = vmul.f32 %v4378_v35, %v4378_v35  ;;  %v4387_v45 = vadd.f32 %v1916_v21, %v4300_v38  ;;  %v1918_v48 = vpop.f32.mrb[15].mxu0 }
 0x831   :  { %v1941_v50 = vadd.f32 %v1940_v0, %v4381_v37  ;;  %v1965_v53 = vmul.f32 %v4381_v37, %v4381_v37  ;;  %v4393_v6 = vadd.f32 %v1918_v48, %v4303_v39 }
 0x832   :  { %v1973_v7 = vadd.f32 %v1972_v32, %v1964_v55  ;;  %v1929_v54 = vadd.f32 %v1928_v41, %v4387_v45  ;;  %v1966_v43 = vmul.f32 %v4387_v45, %v4387_v45 }
 0x833   :  { %v1986_v47 = vadd.f32 %v1985_v33, %v1965_v53  ;;  %v1942_v51 = vadd.f32 %v1941_v50, %v4393_v6  ;;  %v1967_v38 = vmul.f32 %v4393_v6, %v4393_v6 }
 0x834   :  { %v1930_v59 = vrot.slane %v1929_v54, 4  ;;  %v1974_v61 = vadd.f32 %v1973_v7, %v1966_v43 }
 0x835   :  { %v1943_v62 = vrot.slane %v1942_v51, 4  ;;  %v1987_v63 = vadd.f32 %v1986_v47, %v1967_v38 }
 0x836   :  { %v1931_v2 = vadd.f32 %v1930_v59, %v1929_v54  ;;  %v1975_v3 = vrot.slane %v1974_v61, 4 }
 0x837   :  { %v1944_v39 = vadd.f32 %v1943_v62, %v1942_v51  ;;  %v1988_v4 = vrot.slane %v1987_v63, 4 }
 0x838   :  { %v1932_v56 = vrot.slane %v1931_v2, 2  ;;  %v1976_v57 = vadd.f32 %v1975_v3, %v1974_v61 }
 0x839   :  { %v1945_v8 = vrot.slane %v1944_v39, 2  ;;  %v1989_v9 = vadd.f32 %v1988_v4, %v1987_v63 }
 0x83a   :  { %v1933_v10 = vadd.f32 %v1932_v56, %v1931_v2  ;;  %v1977_v11 = vrot.slane %v1976_v57, 2 }
 0x83b   :  { %v1946_v12 = vadd.f32 %v1945_v8, %v1944_v39  ;;  %v1990_v13 = vrot.slane %v1989_v9, 2 }
 0x83c   :  { %v1934_v14 = vrot.slane %v1933_v10, 1  ;;  %v1978_v16 = vadd.f32 %v1977_v11, %v1976_v57 }
 0x83d   :  { %v1947_v18 = vrot.slane %v1946_v12, 1  ;;  %v1991_v19 = vadd.f32 %v1990_v13, %v1989_v9 }
 0x83e   :  { %v1935_v20 = vadd.f32 %v1934_v14, %v1933_v10  ;;  %v1979_v23 = vrot.slane %v1978_v16, 1 }
 0x83f   :  { %v1948_v24 = vadd.f32 %v1947_v18, %v1946_v12  ;;  %v1992_v25 = vrot.slane %v1991_v19, 1 }
 0x840   :  { %v4401_v27 = vmul.f32 0.015625, %v1935_v20  ;;  %v1980_v28 = vadd.f32 %v1979_v23, %v1978_v16 }
 0x841   :  { %v4403_v30 = vmul.f32 0.015625, %v1948_v24  ;;  %v1993_v31 = vadd.f32 %v1992_v25, %v1991_v19 }
 0x842   :  { %v1994_v0 = vmul.f32 0.015625, %v1980_v28  ;;  %v1996_v29 = vmul.f32 %v4401_v27, %v4401_v27  ;;  %v2016_v32 = vsub.f32 %v4387_v45, %v4401_v27  ;;  %v2002_v33 = vsub.f32 %v4306_v40, %v4401_v27 }
 0x843   :  { %v1995_v34 = vmul.f32 0.015625, %v1993_v31  ;;  %v1997_v36 = vmul.f32 %v4403_v30, %v4403_v30  ;;  %v2017_v21 = vsub.f32 %v4393_v6, %v4403_v30  ;;  %v2003_v41 = vsub.f32 %v4309_v42, %v4403_v30 }
 0x844   :  { %v1998_v55 = vsub.f32 %v1994_v0, %v1996_v29  ;;  %v2005_v48 = vsub.f32 %v4315_v46, %v4403_v30  ;;  %v2004_v45 = vsub.f32 %v4312_v44, %v4401_v27  ;;  %v2007_v40 = vsub.f32 %v4333_v60, %v4403_v30 }
 0x845   :  { %v1999_v50 = vsub.f32 %v1995_v34, %v1997_v36  ;;  %v2009_v53 = vsub.f32 %v4345_v5, %v4403_v30  ;;  %v2006_v6 = vsub.f32 %v4330_v58, %v4401_v27  ;;  %v2008_v42 = vsub.f32 %v4339_v1, %v4401_v27 }
 0x846   :  { %v2000_v7 = vmax.f32 %v1998_v55, 0.0  ;;  %v2011_v46 = vsub.f32 %v4357_v17, %v4403_v30  ;;  %v2013_v44 = vsub.f32 %v4369_v26, %v4403_v30  ;;  %v2010_v60 = vsub.f32 %v4354_v15, %v4401_v27  ;;  %v1921_v17 = vld [vmem:[%s4564_s11] sm:$0x3] }
 0x847   :  { %v2001_v54 = vmax.f32 %v1999_v50, 0.0  ;;  %v2012_v5 = vsub.f32 %v4363_v22, %v4401_v27  ;;  %v2015_v58 = vsub.f32 %v4381_v37, %v4403_v30  ;;  %v2014_v1 = vsub.f32 %v4378_v35, %v4401_v27  ;;  %v1922_v15 = vld [vmem:[%s4565_s12] sm:$0x3] }
 0x848   :  { %v2018_v43 = vadd.f32 1e-05, %v2000_v7  ;;  %v4448_v22 = vrot.slane %v1921_v17, %v3660_v49  ;;  %v2046_v37 = vrot.slane %v1921_v17, %v3667_v52  ;;  %v4452_v51 = vrot.slane %v1922_v15, %v3660_v49 }
 0x849   :  { %v2019_v47 = vadd.f32 1e-05, %v2001_v54  ;;  %v2073_v38 = vrot.slane %v1922_v15, %v3667_v52 }
 0x84a   :  { %3321 = vrsqrt.f32 %v2018_v43 }
 0x84b   :  { %3323 = vrsqrt.f32 %v2019_v47 }
 0x854   :  { %v3322_v26 = vpop.eup %3321 }
 0x855   :  { %v3324_v59 = vpop.eup %3323  ;;  %v2036_v61 = vmul.f32 %v3322_v26, %v2016_v32  ;;  %v2022_v62 = vmul.f32 %v3322_v26, %v2002_v33  ;;  %v2024_v63 = vmul.f32 %v3322_v26, %v2004_v45  ;;  %v2026_v2 = vmul.f32 %v3322_v26, %v2006_v6 }
 0x856   :  { %v2037_v3 = vmul.f32 %v3324_v59, %v2017_v21  ;;  %v2023_v39 = vmul.f32 %v3324_v59, %v2003_v41  ;;  %v2025_v4 = vmul.f32 %v3324_v59, %v2005_v48  ;;  %v2027_v56 = vmul.f32 %v3324_v59, %v2007_v40 }
 0x857   :  { %v2049_v57 = vmul.f32 %v4448_v22, %v2022_v62  ;;  %v2051_v8 = vmul.f32 %v4448_v22, %v2024_v63  ;;  %v2029_v9 = vmul.f32 %v3324_v59, %v2009_v53  ;;  %v2028_v10 = vmul.f32 %v3322_v26, %v2008_v42 }
 0x858   :  { %v2050_v11 = vmul.f32 %v2046_v37, %v2023_v39  ;;  %v2052_v49 = vmul.f32 %v2046_v37, %v2025_v4  ;;  %v2054_v12 = vmul.f32 %v2046_v37, %v2027_v56  ;;  %v2053_v52 = vmul.f32 %v4448_v22, %v2026_v2 }
 0x859   :  { %v2076_v13 = vadd.f32 %v4452_v51, %v2049_v57  ;;  %v2078_v14 = vadd.f32 %v4452_v51, %v2051_v8  ;;  %v2056_v16 = vmul.f32 %v2046_v37, %v2029_v9  ;;  %v2055_v18 = vmul.f32 %v4448_v22, %v2028_v10  ;;  %v3316_v10 = vld [vmem:[%s4570_s17 + $0x18] sm:$0xff]  }
 0x85a   :  { %v2077_v19 = vadd.f32 %v2073_v38, %v2050_v11  ;;  %v2079_v20 = vadd.f32 %v2073_v38, %v2052_v49  ;;  %v2081_v23 = vadd.f32 %v2073_v38, %v2054_v12  ;;  %v2080_v24 = vadd.f32 %v4452_v51, %v2053_v52  ;;  %v3317_v11 = vld [vmem:[%s4570_s17 + $0x20] sm:$0xff]   ;;  %v3318_v49 = vld [vmem:[%s4570_s17 + $0x28] sm:$0xff]   ;;  %v3319_v12 = vld [vmem:[%s4570_s17 + $0x30] sm:$0xff]  }
 0x85b   :  { %v2092_v25 = vmax.f32 %v2076_v13, 0.0  ;;  %v2094_v28 = vmax.f32 %v2078_v14, 0.0  ;;  %v2083_v30 = vadd.f32 %v2073_v38, %v2056_v16  ;;  %v2082_v31 = vadd.f32 %v4452_v51, %v2055_v18  ;;  %v3320_v52 = vld [vmem:[%s4570_s17 + $0x38] sm:$0xff]   ;;  %v2831_v14 = vld [vmem:[%s4567_s14] ss:$0 sm:$0xff] }
 0x85c   :  { %v2093_v0 = vmax.f32 %v2077_v19, 0.0  ;;  %v2095_v29 = vmax.f32 %v2079_v20, 0.0  ;;  %v2097_v32 = vmax.f32 %v2081_v23, 0.0  ;;  %v2096_v33 = vmax.f32 %v2080_v24, 0.0 }
 0x85d   :  { %v2108_v34 = vpack.c.bf16 %v2094_v28, %v2092_v25  ;;  %v2099_v36 = vmax.f32 %v2083_v30, 0.0  ;;  %v2098_v21 = vmax.f32 %v2082_v31, 0.0  ;;  %v2031_v41 = vmul.f32 %v3324_v59, %v2011_v46 }
 0x85e   :  { %v2109_v55 = vpack.c.bf16 %v2095_v29, %v2093_v0  ;;  %v2033_v48 = vmul.f32 %v3324_v59, %v2013_v44  ;;  %v2030_v45 = vmul.f32 %v3322_v26, %v2010_v60  ;;  %v2032_v40 = vmul.f32 %v3322_v26, %v2012_v5 }
 0x85f   :  { %v2111_v50 = vpack.c.bf16 %v2099_v36, %v2097_v32  ;;  %v2110_v53 = vpack.c.bf16 %v2098_v21, %v2096_v33  ;;  %v2058_v6 = vmul.f32 %v2046_v37, %v2031_v41  ;;  %v2035_v42 = vmul.f32 %v3324_v59, %v2015_v58 }
 0x860   :  { %2283 = vmatprep.mubr.bf16.mxu1 %v2109_v55  ;;  %v2060_v7 = vmul.f32 %v2046_v37, %v2033_v48  ;;  %v2057_v54 = vmul.f32 %v4448_v22, %v2030_v45  ;;  %v2059_v43 = vmul.f32 %v4448_v22, %v2032_v40  ;;  %v2064_v47 = vmul.f32 %v2046_v37, %v2037_v3 }
 0x861   :  { %2284 = vmatmul.mubr.bf16.vlgmr.msra.gmra.mrb[0].mxu1 %v2108_v34  ;;  %v2085_v17 = vadd.f32 %v2073_v38, %v2058_v6  ;;  %v2062_v15 = vmul.f32 %v2046_v37, %v2035_v42  ;;  %v2034_v46 = vmul.f32 %v3322_v26, %v2014_v1  ;;  %v2063_v44 = vmul.f32 %v4448_v22, %v2036_v61 }
 0x862   :  { %2291 = vmatprep.mubr.bf16.mxu1 %v2111_v50  ;;  %v2087_v60 = vadd.f32 %v2073_v38, %v2060_v7  ;;  %v2084_v5 = vadd.f32 %v4452_v51, %v2057_v54  ;;  %v2086_v58 = vadd.f32 %v4452_v51, %v2059_v43  ;;  %v2091_v59 = vadd.f32 %v2073_v38, %v2064_v47 }
 0x863   :  { %v2101_v62 = vmax.f32 %v2085_v17, 0.0  ;;  %v2089_v63 = vadd.f32 %v2073_v38, %v2062_v15  ;;  %v2061_v2 = vmul.f32 %v4448_v22, %v2034_v46  ;;  %v2090_v3 = vadd.f32 %v4452_v51, %v2063_v44  ;;  %v3313_v22 = vld [vmem:[%s4570_s17] sm:$0xff]   ;;  %v3315_v38 = vld [vmem:[%s4570_s17 + $0x10] sm:$0xff]  }
 0x864   :  { %v2103_v37 = vmax.f32 %v2087_v60, 0.0  ;;  %v2100_v39 = vmax.f32 %v2084_v5, 0.0  ;;  %v2102_v4 = vmax.f32 %v2086_v58, 0.0  ;;  %v2107_v35 = vmax.f32 %v2091_v59, 0.0  ;;  %2921 = vmatprep.subr.bf16.mxu0 %v3313_v22  ;;  %2951 = vmatprep.subr.bf16.mxu1 %v3313_v22 }
 0x865   :  { %v2105_v27 = vmax.f32 %v2089_v63, 0.0  ;;  %v2088_v1 = vadd.f32 %v4452_v51, %v2061_v2  ;;  %v2106_v26 = vmax.f32 %v2090_v3, 0.0  ;;  %2922 = vmatpush3.bf16.msra.mxu0 %v3313_v22  ;;  %2959 = vmatpush3.bf16.msra.mxu1 %v3313_v22  ;;  %v3314_v51 = vld [vmem:[%s4570_s17 + $0x8] sm:$0xff]  }
 0x866   :  { %v2113_v61 = vpack.c.bf16 %v2103_v37, %v2101_v62  ;;  %v2112_v56 = vpack.c.bf16 %v2102_v4, %v2100_v39  ;;  %2923 = vmatprep.subr.bf16.mxu0 %v3314_v51  ;;  %2952 = vmatprep.subr.bf16.mxu1 %v3314_v51 }
 0x867   :  { %v2115_v57 = vpack.c.bf16 %v2107_v35, %v2105_v27  ;;  %v2104_v8 = vmax.f32 %v2088_v1, 0.0 }
 0x869   :  { %2292 = vmatmul.mubr.bf16.gmra.mrb[4].mxu1 %v2110_v53  ;;  %v2114_v9 = vpack.c.bf16 %v2106_v26, %v2104_v8  ;;  %2924 = vmatpush3.bf16.msra.mxu0 %v3314_v51 }
 0x86a   :  { %2299 = vmatprep.mubr.bf16.mxu1 %v2113_v61  ;;  %2960 = vmatpush3.bf16.msra.mxu1 %v3314_v51 }
 0x86b   :  { %2925 = vmatprep.subr.bf16.mxu0 %v3315_v38  ;;  %2953 = vmatprep.subr.bf16.mxu1 %v3315_v38 }
 0x86d   :  { %2926 = vmatpush3.bf16.msra.mxu0 %v3315_v38 }
 0x86e   :  { %2961 = vmatpush3.bf16.msra.mxu1 %v3315_v38  ;;  %2927 = vmatprep.subr.bf16.mxu0 %v3316_v10 }
 0x86f   :  { %2954 = vmatprep.subr.bf16.mxu1 %v3316_v10 }
 0x871   :  { %2300 = vmatmul.mubr.bf16.gmra.mrb[8].mxu1 %v2112_v56  ;;  %2928 = vmatpush3.bf16.msra.mxu0 %v3316_v10 }
 0x872   :  { %2307 = vmatprep.mubr.bf16.mxu1 %v2115_v57  ;;  %2962 = vmatpush3.bf16.msra.mxu1 %v3316_v10 }
 0x873   :  { %2929 = vmatprep.subr.bf16.mxu0 %v3317_v11  ;;  %2955 = vmatprep.subr.bf16.mxu1 %v3317_v11 }
 0x875   :  { %2930 = vmatpush3.bf16.msra.mxu0 %v3317_v11 }
 0x876   :  { %2963 = vmatpush3.bf16.msra.mxu1 %v3317_v11  ;;  %2931 = vmatprep.subr.bf16.mxu0 %v3318_v49 }
 0x877   :  { %2956 = vmatprep.subr.bf16.mxu1 %v3318_v49 }
 0x879   :  { %2308 = vmatmul.mubr.bf16.gmra.mrb[12].mxu1 %v2114_v9  ;;  %2932 = vmatpush3.bf16.msra.mxu0 %v3318_v49 }
 0x87a   :  { %2964 = vmatpush3.bf16.msra.mxu1 %v3318_v49  ;;  %2933 = vmatprep.subr.bf16.mxu0 %v3319_v12 }
 0x87b   :  { %2957 = vmatprep.subr.bf16.mxu1 %v3319_v12 }
 0x87d   :  { %2934 = vmatpush3.bf16.msra.mxu0 %v3319_v12 }
 0x87e   :  { %2965 = vmatpush3.bf16.msra.mxu1 %v3319_v12  ;;  %2935 = vmatprep.subr.bf16.mxu0 %v3320_v52 }
 0x87f   :  { %2958 = vmatprep.subr.bf16.mxu1 %v3320_v52 }
 0x881   :  { %2936 = vmatpush3.bf16.msra.mxu0 %v3320_v52 }
 0x882   :  { %2966 = vmatpush3.bf16.msra.mxu1 %v3320_v52 }
 0x934   :  { %v2885_v13 = vpop.f32.mrb[0].mxu1 }
 0x935   :  { %v2886_v16 = vpop.f32.mrb[1].mxu1 }
 0x936   :  { %v2887_v18 = vadd.f32 %v2886_v16, %v2885_v13  ;;  %v2888_v19 = vpop.f32.mrb[2].mxu1 }
 0x937   :  { %v2889_v20 = vpop.f32.mrb[3].mxu1 }
 0x938   :  { %v4501_v23 = vadd.f32 %v2887_v18, %v2831_v14  ;;  %v2890_v24 = vadd.f32 %v2889_v20, %v2888_v19 }
 0x93a   :  { %v4503_v25 = vadd.f32 %v2890_v24, %v2831_v14  ;;  %v2332_v28 = vmul.f32 %v4501_v23, %v4501_v23 }
 0x93c   :  { %v2318_v30 = vadd.f32 %v4503_v25, %v4501_v23  ;;  %v2333_v31 = vmul.f32 %v4503_v25, %v4503_v25  ;;  %v2891_v0 = vpop.f32.mrb[4].mxu1 }
 0x93d   :  { %v2892_v29 = vpop.f32.mrb[5].mxu1 }
 0x93e   :  { %v2340_v32 = vadd.f32 %v2333_v31, %v2332_v28  ;;  %v2893_v33 = vadd.f32 %v2892_v29, %v2891_v0  ;;  %v2894_v34 = vpop.f32.mrb[6].mxu1 }
 0x93f   :  { %v2895_v36 = vpop.f32.mrb[7].mxu1 }
 0x940   :  { %v4511_v21 = vadd.f32 %v2893_v33, %v2831_v14  ;;  %v2896_v41 = vadd.f32 %v2895_v36, %v2894_v34 }
 0x942   :  { %v2319_v55 = vadd.f32 %v2318_v30, %v4511_v21  ;;  %v2334_v48 = vmul.f32 %v4511_v21, %v4511_v21  ;;  %v4516_v45 = vadd.f32 %v2896_v41, %v2831_v14 }
 0x944   :  { %v2341_v40 = vadd.f32 %v2340_v32, %v2334_v48  ;;  %v2320_v50 = vadd.f32 %v2319_v55, %v4516_v45  ;;  %v2335_v53 = vmul.f32 %v4516_v45, %v4516_v45  ;;  %v2897_v6 = vpop.f32.mrb[8].mxu1  ;;  %v2848_v48 = vld [vmem:[%s4568_s15] ss:$0 sm:$0xff] }
 0x945   :  { %v2898_v42 = vpop.f32.mrb[9].mxu1 }
 0x946   :  { %v2342_v7 = vadd.f32 %v2341_v40, %v2335_v53  ;;  %v2899_v54 = vadd.f32 %v2898_v42, %v2897_v6  ;;  %v2900_v43 = vpop.f32.mrb[10].mxu1 }
 0x947   :  { %v2901_v47 = vpop.f32.mrb[11].mxu1 }
 0x948   :  { %v2302_v17 = vadd.f32 %v2899_v54, %v2831_v14  ;;  %v2902_v15 = vadd.f32 %v2901_v47, %v2900_v43 }
 0x94a   :  { %v2321_v46 = vadd.f32 %v2320_v50, %v2302_v17  ;;  %v2336_v44 = vmul.f32 %v2302_v17, %v2302_v17  ;;  %v2305_v60 = vadd.f32 %v2902_v15, %v2831_v14 }
 0x94c   :  { %v2343_v5 = vadd.f32 %v2342_v7, %v2336_v44  ;;  %v2322_v58 = vadd.f32 %v2321_v46, %v2305_v60  ;;  %v2337_v59 = vmul.f32 %v2305_v60, %v2305_v60  ;;  %v2903_v62 = vpop.f32.mrb[12].mxu1 }
 0x94d   :  { %v2904_v63 = vpop.f32.mrb[13].mxu1 }
 0x94e   :  { %v2344_v2 = vadd.f32 %v2343_v5, %v2337_v59  ;;  %v2905_v3 = vadd.f32 %v2904_v63, %v2903_v62  ;;  %v2906_v37 = vpop.f32.mrb[14].mxu1 }
 0x94f   :  { %v2907_v39 = vpop.f32.mrb[15].mxu1 }
 0x950   :  { %v2310_v4 = vadd.f32 %v2905_v3, %v2831_v14  ;;  %v2908_v35 = vadd.f32 %v2907_v39, %v2906_v37 }
 0x952   :  { %v2323_v27 = vadd.f32 %v2322_v58, %v2310_v4  ;;  %v2338_v1 = vmul.f32 %v2310_v4, %v2310_v4  ;;  %v2313_v26 = vadd.f32 %v2908_v35, %v2831_v14 }
 0x954   :  { %v2345_v61 = vadd.f32 %v2344_v2, %v2338_v1  ;;  %v2324_v56 = vadd.f32 %v2323_v27, %v2313_v26  ;;  %v2339_v57 = vmul.f32 %v2313_v26, %v2313_v26 }
 0x956   :  { %v2325_v8 = vrot.slane %v2324_v56, 4  ;;  %v2346_v9 = vadd.f32 %v2345_v61, %v2339_v57 }
 0x958   :  { %v2326_v22 = vadd.f32 %v2325_v8, %v2324_v56  ;;  %v2347_v51 = vrot.slane %v2346_v9, 4 }
 0x95a   :  { %v2327_v38 = vrot.slane %v2326_v22, 2  ;;  %v2348_v10 = vadd.f32 %v2347_v51, %v2346_v9 }
 0x95c   :  { %v2328_v11 = vadd.f32 %v2327_v38, %v2326_v22  ;;  %v2349_v49 = vrot.slane %v2348_v10, 2  ;;  %v2850_v22 = vld [vmem:[%s4571_s18] ss:$0 sm:$0xff] }
 0x95e   :  { %v2329_v12 = vrot.slane %v2328_v11, 1  ;;  %v2350_v52 = vadd.f32 %v2349_v49, %v2348_v10 }
 0x960   :  { %v2330_v13 = vadd.f32 %v2329_v12, %v2328_v11  ;;  %v2351_v16 = vrot.slane %v2350_v52, 1 }
 0x962   :  { %v2331_v18 = vmul.f32 0.015625, %v2330_v13  ;;  %v2352_v19 = vadd.f32 %v2351_v16, %v2350_v52 }
 0x964   :  { %v2353_v20 = vmul.f32 0.015625, %v2352_v19  ;;  %v2354_v24 = vmul.f32 %v2331_v18, %v2331_v18  ;;  %v2364_v14 = vsub.f32 %v2313_v26, %v2331_v18  ;;  %v2357_v28 = vsub.f32 %v4501_v23, %v2331_v18 }
 0x965   :  { %v2358_v30 = vsub.f32 %v4503_v25, %v2331_v18  ;;  %v2361_v31 = vsub.f32 %v2302_v17, %v2331_v18  ;;  %v2362_v0 = vsub.f32 %v2305_v60, %v2331_v18  ;;  %v2359_v29 = vsub.f32 %v4511_v21, %v2331_v18  ;;  %v2849_v21 = vld [vmem:[%s4569_s16] ss:$0 sm:$0xff] }
 0x966   :  { %v2355_v32 = vsub.f32 %v2353_v20, %v2354_v24  ;;  %v2360_v33 = vsub.f32 %v4516_v45, %v2331_v18  ;;  %v2363_v34 = vsub.f32 %v2310_v4, %v2331_v18 }
 0x968   :  { %v2356_v36 = vmax.f32 %v2355_v32, 0.0 }
 0x96a   :  { %v2365_v41 = vadd.f32 1e-05, %v2356_v36 }
 0x96c   :  { %3325 = vrsqrt.f32 %v2365_v41 }
 0x976   :  { %v3326_v55 = vpop.eup %3325 }
 0x977   :  { %v2374_v40 = vmul.f32 %v3326_v55, %v2364_v14  ;;  %v2367_v23 = vmul.f32 %v3326_v55, %v2357_v28  ;;  %v2368_v50 = vmul.f32 %v3326_v55, %v2358_v30  ;;  %v2371_v25 = vmul.f32 %v3326_v55, %v2361_v31 }
 0x978   :  { %v2372_v53 = vmul.f32 %v3326_v55, %v2362_v0  ;;  %v2369_v6 = vmul.f32 %v3326_v55, %v2359_v29  ;;  %v2370_v45 = vmul.f32 %v3326_v55, %v2360_v33  ;;  %v2373_v42 = vmul.f32 %v3326_v55, %v2363_v34 }
 0x979   :  { %v2388_v7 = vmul.f32 %v2848_v48, %v2374_v40  ;;  %v2381_v54 = vmul.f32 %v2848_v48, %v2367_v23  ;;  %v2382_v43 = vmul.f32 %v2848_v48, %v2368_v50  ;;  %v2385_v47 = vmul.f32 %v2848_v48, %v2371_v25 }
 0x97a   :  { %v2386_v17 = vmul.f32 %v2848_v48, %v2372_v53  ;;  %v2383_v15 = vmul.f32 %v2848_v48, %v2369_v6  ;;  %v2384_v46 = vmul.f32 %v2848_v48, %v2370_v45  ;;  %v2387_v44 = vmul.f32 %v2848_v48, %v2373_v42 }
 0x97b   :  { %v2402_v60 = vadd.f32 %v2849_v21, %v2388_v7  ;;  %v2395_v5 = vadd.f32 %v2849_v21, %v2381_v54  ;;  %v2396_v58 = vadd.f32 %v2849_v21, %v2382_v43  ;;  %v2399_v59 = vadd.f32 %v2849_v21, %v2385_v47 }
 0x97c   :  { %v2400_v62 = vadd.f32 %v2849_v21, %v2386_v17  ;;  %v2397_v63 = vadd.f32 %v2849_v21, %v2383_v15  ;;  %v2398_v2 = vadd.f32 %v2849_v21, %v2384_v46  ;;  %v2401_v3 = vadd.f32 %v2849_v21, %v2387_v44 }
 0x97d   :  { %v2410_v37 = vmax.f32 %v2402_v60, 0.0  ;;  %v2403_v39 = vmax.f32 %v2395_v5, 0.0  ;;  %v2404_v4 = vmax.f32 %v2396_v58, 0.0  ;;  %v2407_v35 = vmax.f32 %v2399_v59, 0.0 }
 0x97e   :  { %v2408_v27 = vmax.f32 %v2400_v62, 0.0  ;;  %v2405_v1 = vmax.f32 %v2397_v63, 0.0  ;;  %v2406_v26 = vmax.f32 %v2398_v2, 0.0  ;;  %v2409_v61 = vmax.f32 %v2401_v3, 0.0 }
 0x97f   :  { %v2411_v56 = vpack.c.bf16 %v2404_v4, %v2403_v39 }
 0x980   :  { %v2413_v57 = vpack.c.bf16 %v2408_v27, %v2407_v35  ;;  %v2412_v8 = vpack.c.bf16 %v2406_v26, %v2405_v1  ;;  %v2414_v9 = vpack.c.bf16 %v2410_v37, %v2409_v61 }
 0x981   :  { %2937 = vmatprep.mubr.bf16.mxu0 %v2411_v56 }
 0x982   :  { %2941 = vmatprep.mubr.bf16.mxu1 %v2413_v57  ;;  %2938 = vmatmul.mubr.bf16.vlgmr.msra.gmra.mrb[16].mxu0 %v2412_v8 }
 0x983   :  { %2942 = vmatmul.mubr.bf16.vlgmr.msra.gmra.mrb[16].mxu1 %v2414_v9 }
 0xa55   :  { %v2939_v51 = vpop.f32.mrb[16].mxu0 }
 0xa56   :  { %v2529_v38 = vadd.f32 %v2939_v51, %v2850_v22  ;;  %v2943_v10 = vpop.f32.mrb[16].mxu1  ;;  %v2520_v11 = vpop.f32.mrb[17].mxu0 }
 0xa57   :  { %v2545_v49 = vadd.f32 %v2943_v10, %v2850_v22  ;;  %v2521_v12 = vadd.f32 %v2850_v22, %v2520_v11  ;;  %v2536_v52 = vpop.f32.mrb[17].mxu1  ;;  %v2940_v13 = vpop.f32.mrb[18].mxu0 }
 0xa58   :  { %v2861_v16 = vmul.f32 -1.442695, %v2529_v38  ;;  %v2537_v18 = vadd.f32 %v2850_v22, %v2536_v52  ;;  %v2532_v19 = vadd.f32 %v2940_v13, %v2850_v22  ;;  %v2944_v20 = vpop.f32.mrb[18].mxu1  ;;  %v2523_v24 = vpop.f32.mrb[19].mxu0 }
 0xa59   :  { %v2865_v14 = vmul.f32 -1.442695, %v2545_v49  ;;  %v2859_v28 = vmul.f32 -1.442695, %v2521_v12  ;;  %v2548_v30 = vadd.f32 %v2944_v20, %v2850_v22  ;;  %v2524_v31 = vadd.f32 %v2850_v22, %v2523_v24  ;;  %v2539_v0 = vpop.f32.mrb[19].mxu1 }
 0xa5a   :  { %3327 = vpow2.f32 %v2861_v16  ;;  %v2863_v29 = vmul.f32 -1.442695, %v2537_v18  ;;  %v2862_v32 = vmul.f32 -1.442695, %v2532_v19  ;;  %v2540_v33 = vadd.f32 %v2850_v22, %v2539_v0 }
 0xa5b   :  { %3329 = vpow2.f32 %v2865_v14  ;;  %v2866_v34 = vmul.f32 -1.442695, %v2548_v30  ;;  %v2860_v36 = vmul.f32 -1.442695, %v2524_v31 }
 0xa5c   :  { %3331 = vpow2.f32 %v2859_v28  ;;  %v2864_v41 = vmul.f32 -1.442695, %v2540_v33 }
 0xa5d   :  { %3333 = vpow2.f32 %v2863_v29 }
 0xa5e   :  { %3335 = vpow2.f32 %v2862_v32 }
 0xa5f   :  { %3337 = vpow2.f32 %v2866_v34 }
 0xa60   :  { %3339 = vpow2.f32 %v2860_v36 }
 0xa61   :  { %3341 = vpow2.f32 %v2864_v41 }
 0xa64   :  { %v3328_v55 = vpop.eup %3327 }
 0xa65   :  { %v3330_v48 = vpop.eup %3329  ;;  %v2577_v40 = vadd.f32 1.0, %v3328_v55 }
 0xa66   :  { %v3332_v23 = vpop.eup %3331  ;;  %v2581_v50 = vadd.f32 1.0, %v3330_v48 }
 0xa67   :  { %v3334_v25 = vpop.eup %3333  ;;  %3343 = vrcp.f32 %v2577_v40  ;;  %v2575_v21 = vadd.f32 1.0, %v3332_v23 }
 0xa68   :  { %v3336_v53 = vpop.eup %3335  ;;  %3345 = vrcp.f32 %v2581_v50  ;;  %v2579_v6 = vadd.f32 1.0, %v3334_v25 }
 0xa69   :  { %v3338_v45 = vpop.eup %3337  ;;  %3347 = vrcp.f32 %v2575_v21  ;;  %v2578_v42 = vadd.f32 1.0, %v3336_v53 }
 0xa6a   :  { %v3340_v7 = vpop.eup %3339  ;;  %3349 = vrcp.f32 %v2579_v6  ;;  %v2582_v54 = vadd.f32 1.0, %v3338_v45 }
 0xa6b   :  { %v3342_v43 = vpop.eup %3341  ;;  %3351 = vrcp.f32 %v2578_v42  ;;  %v2576_v47 = vadd.f32 1.0, %v3340_v7 }
 0xa6c   :  { %3353 = vrcp.f32 %v2582_v54  ;;  %v2580_v17 = vadd.f32 1.0, %v3342_v43 }
 0xa6d   :  { %3355 = vrcp.f32 %v2576_v47 }
 0xa6e   :  { %3357 = vrcp.f32 %v2580_v17 }
 0xa71   :  { %v3344_v15 = vpop.eup %3343 }
 0xa72   :  { %v3346_v46 = vpop.eup %3345  ;;  %2601 = vst [vmem:[%s4572_s19 + $0x10] sm:$0xff] %v3344_v15 }
 0xa73   :  { %v3348_v44 = vpop.eup %3347  ;;  %2605 = vst [vmem:[%s4572_s19 + $0x30] sm:$0xff] %v3346_v46 }
 0xa74   :  { %v3350_v60 = vpop.eup %3349  ;;  %2599 = vst [vmem:[%s4572_s19] sm:$0xff] %v3348_v44 }
 0xa75   :  { %v3352_v5 = vpop.eup %3351  ;;  %2603 = vst [vmem:[%s4572_s19 + $0x20] sm:$0xff] %v3350_v60 }
 0xa76   :  { %v3354_v58 = vpop.eup %3353  ;;  %2602 = vst [vmem:[%s4572_s19 + $0x18] sm:$0xff] %v3352_v5 }
 0xa77   :  { %v3356_v59 = vpop.eup %3355  ;;  %2606 = vst [vmem:[%s4572_s19 + $0x38] sm:$0xff] %v3354_v58 }
 0xa78   :  { %v3358_v62 = vpop.eup %3357  ;;  %2600 = vst [vmem:[%s4572_s19 + $0x8] sm:$0xff] %v3356_v59 }
 0xa79   :  { %2604 = vst [vmem:[%s4572_s19 + $0x28] sm:$0xff] %v3358_v62 }

</bundles_post_ra>
